<compile_context>
chip_gen: v7x
topology: tpu7x:2x2x1
jax: 0.10.0
libtpu: 0.0.40
codegen_flags: <defaults>
</compile_context>

<pallas_src>
import jax
import jax.numpy as jnp
from jax.experimental import pallas as pl
from jax.experimental.pallas import tpu as pltpu

DTYPE = jnp.bfloat16


# --------------------------------------------------------------------------
# Tiling / budget helpers
# --------------------------------------------------------------------------

def _round_up(x, m):
    return ((x + m - 1) // m) * m


def _vmem_limit_bytes():
    """Per-generation scoped-VMEM budget with headroom (v5e/v6e: 128 MiB, v7x: 64 MiB)."""
    try:
        cap = int(pltpu.get_tpu_info().vmem_capacity_bytes)
    except Exception:
        cap = 64 * 1024 * 1024  # conservative (v7x) fallback
    return min((cap * 3) // 4, 96 * 1024 * 1024)


def _pick_m_tile(M, pref=512, align=16):
    """16-aligned (bf16 sublane packing) row tile <= pref, aiming for >= 2 blocks
    along the parallel M axis so both v7x TensorCores get work."""
    if M <= align:
        return align
    return max(align, min(pref, _round_up((M + 1) // 2, align)))


def _pick_i_tile(I, pref=512, align=128):
    """128-aligned (lane) chunk of the intermediate dimension."""
    if I <= pref:
        return _round_up(I, align)
    return pref


# --------------------------------------------------------------------------
# Fused MLP kernel:  out = (silu(x @ Wg) * (x @ Wu)) @ Wd
#   grid = (M_blocks [parallel], I_blocks [arbitrary / reduction])
#   x tile [tm, H] resident across the inner axis; fp32 [tm, H] accumulator.
# --------------------------------------------------------------------------

def _mlp_kernel(x_ref, wg_ref, wu_ref, wd_ref, o_ref, acc_ref):
    j = pl.program_id(1)

    x = x_ref[...]                                             # [tm, H] bf16 (shared)
    g = jnp.dot(x, wg_ref[...], preferred_element_type=jnp.float32)   # [tm, ti] fp32
    u = jnp.dot(x, wu_ref[...], preferred_element_type=jnp.float32)   # [tm, ti] fp32
    inter = (jax.nn.silu(g) * u).astype(x_ref.dtype)           # single bf16 cast
    partial = jnp.dot(inter, wd_ref[...], preferred_element_type=jnp.float32)  # [tm, H]

    @pl.when(j == 0)
    def _():
        acc_ref[...] = partial            # write first partial directly (no zero-init)

    @pl.when(j != 0)
    def _():
        acc_ref[...] += partial

    @pl.when(j == pl.num_programs(1) - 1)
    def _():
        o_ref[...] = acc_ref[...].astype(o_ref.dtype)


def pallas_mlp_fused(x2, wg_t, wu_t, wd_t, *, tm_pref=512, ti_pref=512):
    """x2: [M, H]; wg_t/wu_t: [H, I_pad]; wd_t: [I_pad, H].  Returns [M, H]."""
    M, H = x2.shape
    Hw, I_pad = wg_t.shape
    assert Hw == H and wu_t.shape == (H, I_pad) and wd_t.shape == (I_pad, H)

    tm = _pick_m_tile(M, tm_pref)
    ti = _pick_i_tile(I_pad, ti_pref)
    assert I_pad % ti == 0, (I_pad, ti)     # guaranteed by prepare_params padding

    M_pad = _round_up(M, tm)
    if M_pad != M:
        x2 = jnp.pad(x2, ((0, M_pad - M), (0, 0)))

    grid = (M_pad // tm, I_pad // ti)
    itemsize = jnp.dtype(x2.dtype).itemsize

    cost = pl.CostEstimate(
        flops=6 * M_pad * H * I_pad,                       # gate + up + down matmuls
        transcendentals=M_pad * I_pad,                     # silu's exp
        bytes_accessed=(M_pad * H * itemsize               # x read
                        + grid[0] * 3 * H * I_pad * itemsize   # weights per M-block
                        + M_pad * H * itemsize),           # out write
    )

    out = pl.pallas_call(
        _mlp_kernel,
        out_shape=jax.ShapeDtypeStruct((M_pad, H), x2.dtype),
        grid_spec=pltpu.PrefetchScalarGridSpec(
            num_scalar_prefetch=0,
            grid=grid,
            in_specs=[
                pl.BlockSpec((tm, H), lambda i, j: (i, 0)),   # x: resident across j
                pl.BlockSpec((H, ti), lambda i, j: (0, j)),   # Wg chunk
                pl.BlockSpec((H, ti), lambda i, j: (0, j)),   # Wu chunk
                pl.BlockSpec((ti, H), lambda i, j: (j, 0)),   # Wd chunk
            ],
            out_specs=pl.BlockSpec((tm, H), lambda i, j: (i, 0)),
            scratch_shapes=[pltpu.VMEM((tm, H), jnp.float32)],
        ),
        compiler_params=pltpu.CompilerParams(
            dimension_semantics=("parallel", "arbitrary"),
            vmem_limit_bytes=_vmem_limit_bytes(),
        ),
        cost_estimate=cost,
    )(x2, wg_t, wu_t, wd_t)

    if M_pad != M:
        out = out[:M]
    return out


# --------------------------------------------------------------------------
# Parameter prep (one-time) and forward glue
# --------------------------------------------------------------------------

def prepare_params(wg, wu, wd, *, ti_pref=512):
    """PyTorch nn.Linear weights [out, in] -> pre-transposed [in, out],
    zero-padded once along the intermediate dim to a tile multiple (exact)."""
    I, H = wg.shape
    assert wu.shape == (I, H) and wd.shape == (H, I)
    ti = _pick_i_tile(I, ti_pref)
    I_pad = _round_up(I, ti)

    wg_t = jnp.asarray(wg).T          # [H, I]
    wu_t = jnp.asarray(wu).T          # [H, I]
    wd_t = jnp.asarray(wd).T          # [I, H]
    if I_pad != I:
        wg_t = jnp.pad(wg_t, ((0, 0), (0, I_pad - I)))
        wu_t = jnp.pad(wu_t, ((0, 0), (0, I_pad - I)))
        wd_t = jnp.pad(wd_t, ((0, I_pad - I), (0, 0)))
    return dict(wg_t=wg_t, wu_t=wu_t, wd_t=wd_t)


def mlp_forward(x, params):
    """x: [B, S, H] bf16.  Matches MLPLayer.forward (no bias, SiLU gate)."""
    B, S, H = x.shape
    x2 = x.reshape(B * S, H)
    out = pallas_mlp_fused(x2, params["wg_t"], params["wu_t"], params["wd_t"])
    return out.reshape(B, S, H)


# --------------------------------------------------------------------------
# Plain-JAX reference (mirrors the kernel's bf16 intermediate round-trip)
# --------------------------------------------------------------------------

def mlp_reference(x, wg, wu, wd):
    x32 = x.astype(jnp.float32).reshape(-1, x.shape[-1])
    g = x32 @ wg.T.astype(jnp.float32)
    u = x32 @ wu.T.astype(jnp.float32)
    inter = (jax.nn.silu(g) * u).astype(DTYPE).astype(jnp.float32)
    out = inter @ wd.T.astype(jnp.float32)
    return out.astype(DTYPE).reshape(x.shape[:-1] + (wd.shape[0],))


# --------------------------------------------------------------------------
# Demo
# --------------------------------------------------------------------------

if __name__ == "__main__":
    # Small shapes that exercise: M padding (120 -> 128), 2 parallel M blocks,
    # intermediate padding (1000 -> 1024) and a 2-step reduction over I.
    B, S, HIDDEN, INTER = 2, 60, 256, 1000
    STD = 0.02

    key = jax.random.PRNGKey(0)
    kx, kg, ku, kd = jax.random.split(key, 4)

    # PyTorch nn.Linear layout: [out_features, in_features], bias=False, bf16.
    wg = (jax.random.normal(kg, (INTER, HIDDEN), jnp.float32) * STD).astype(DTYPE)
    wu = (jax.random.normal(ku, (INTER, HIDDEN), jnp.float32) * STD).astype(DTYPE)
    wd = (jax.random.normal(kd, (HIDDEN, INTER), jnp.float32) * STD).astype(DTYPE)
    x = jax.random.normal(kx, (B, S, HIDDEN), jnp.float32).astype(DTYPE)

    params = prepare_params(wg, wu, wd)      # one-time transpose + pad

    fwd = jax.jit(mlp_forward)
    out = fwd(x, params)
    jax.block_until_ready(out)

    assert out.shape == (B, S, HIDDEN), out.shape
    assert out.dtype == DTYPE, out.dtype

    ref = mlp_reference(x, wg, wu, wd)
    max_err = float(jnp.max(jnp.abs(out.astype(jnp.float32) - ref.astype(jnp.float32))))
    assert max_err < 1e-2, f"max abs error {max_err}"

    print("KERNEL_OK")
</pallas_src>

<mosaic_0001>
module attributes {stable_mosaic.version = 11 : i64} {
  func.func @_mlp_kernel(%arg0: i32, %arg1: i32, %arg2: memref<64x256xbf16, #tpu.memory_space<vmem>>, %arg3: memref<256x512xbf16, #tpu.memory_space<vmem>>, %arg4: memref<256x512xbf16, #tpu.memory_space<vmem>>, %arg5: memref<512x256xbf16, #tpu.memory_space<vmem>>, %arg6: memref<64x256xbf16, #tpu.memory_space<vmem>>, %arg7: memref<64x256xf32, #tpu.memory_space<vmem>>) attributes {dimension_semantics = [#tpu.dimension_semantics<parallel>, #tpu.dimension_semantics<arbitrary>], iteration_bounds = array<i64: 2, 2>, scalar_prefetch = 0 : i64, scratch_operands = 1 : i64, tpu.core_type = #tpu.core_type<tc>, window_params = [{transform_indices = @transform_0, window_bounds = array<i64: 64, 256>}, {transform_indices = @transform_1, window_bounds = array<i64: 256, 512>}, {transform_indices = @transform_2, window_bounds = array<i64: 256, 512>}, {transform_indices = @transform_3, window_bounds = array<i64: 512, 256>}, {transform_indices = @transform_4, window_bounds = array<i64: 64, 256>}]} {
    %c0 = arith.constant 0 : index
    %c0_0 = arith.constant 0 : index
    %0 = vector.load %arg2[%c0, %c0_0] : memref<64x256xbf16, #tpu.memory_space<vmem>>, vector<64x256xbf16>
    %c0_1 = arith.constant 0 : index
    %c0_2 = arith.constant 0 : index
    %1 = vector.load %arg3[%c0_1, %c0_2] : memref<256x512xbf16, #tpu.memory_space<vmem>>, vector<256x512xbf16>
    %cst = arith.constant dense<0.000000e+00> : vector<64x512xf32>
    %2 = tpu.matmul %0, %1, %cst {dimension_numbers = #tpu.dot_dimension_numbers<[1], [0], [0], [1], [0, 0, 1, 1], [], []>} : vector<64x256xbf16>, vector<256x512xbf16>, vector<64x512xf32> -> vector<64x512xf32>
    %c0_3 = arith.constant 0 : index
    %c0_4 = arith.constant 0 : index
    %3 = vector.load %arg4[%c0_3, %c0_4] : memref<256x512xbf16, #tpu.memory_space<vmem>>, vector<256x512xbf16>
    %cst_5 = arith.constant dense<0.000000e+00> : vector<64x512xf32>
    %4 = tpu.matmul %0, %3, %cst_5 {dimension_numbers = #tpu.dot_dimension_numbers<[1], [0], [0], [1], [0, 0, 1, 1], [], []>} : vector<64x256xbf16>, vector<256x512xbf16>, vector<64x512xf32> -> vector<64x512xf32>
    %5 = arith.negf %2 : vector<64x512xf32>
    %6 = math.exp %5 : vector<64x512xf32>
    %cst_6 = arith.constant 1.000000e+00 : f32
    %7 = vector.broadcast %cst_6 : f32 to vector<64x512xf32>
    %8 = arith.addf %7, %6 : vector<64x512xf32>
    %9 = arith.divf %7, %8 : vector<64x512xf32>
    %10 = arith.mulf %2, %9 : vector<64x512xf32>
    %11 = arith.mulf %10, %4 : vector<64x512xf32>
    %12 = arith.truncf %11 : vector<64x512xf32> to vector<64x512xbf16>
    %c0_7 = arith.constant 0 : index
    %c0_8 = arith.constant 0 : index
    %13 = vector.load %arg5[%c0_7, %c0_8] : memref<512x256xbf16, #tpu.memory_space<vmem>>, vector<512x256xbf16>
    %cst_9 = arith.constant dense<0.000000e+00> : vector<64x256xf32>
    %14 = tpu.matmul %12, %13, %cst_9 {dimension_numbers = #tpu.dot_dimension_numbers<[1], [0], [0], [1], [0, 0, 1, 1], [], []>} : vector<64x512xbf16>, vector<512x256xbf16>, vector<64x256xf32> -> vector<64x256xf32>
    %c0_i32 = arith.constant 0 : i32
    %15 = arith.cmpi eq, %arg1, %c0_i32 : i32
    %16 = arith.extui %15 : i1 to i32
    %c0_i32_10 = arith.constant 0 : i32
    %17 = arith.cmpi ne, %16, %c0_i32_10 : i32
    scf.if %17 {
      %c0_14 = arith.constant 0 : index
      %c0_15 = arith.constant 0 : index
      %24 = vector.load %arg7[%c0_14, %c0_15] : memref<64x256xf32, #tpu.memory_space<vmem>>, vector<64x256xf32>
      tpu.vector_store %arg7[%c0_14, %c0_15], %14 {strides = array<i32>} : memref<64x256xf32, #tpu.memory_space<vmem>>, vector<64x256xf32>,
    } else {
    }
    %c0_i32_11 = arith.constant 0 : i32
    %18 = arith.cmpi ne, %arg1, %c0_i32_11 : i32
    %19 = arith.extui %18 : i1 to i32
    %c0_i32_12 = arith.constant 0 : i32
    %20 = arith.cmpi ne, %19, %c0_i32_12 : i32
    scf.if %20 {
      %c0_14 = arith.constant 0 : index
      %c0_15 = arith.constant 0 : index
      %24 = vector.load %arg7[%c0_14, %c0_15] : memref<64x256xf32, #tpu.memory_space<vmem>>, vector<64x256xf32>
      %25 = arith.addf %24, %14 : vector<64x256xf32>
      %c0_16 = arith.constant 0 : index
      %c0_17 = arith.constant 0 : index
      %26 = vector.load %arg7[%c0_16, %c0_17] : memref<64x256xf32, #tpu.memory_space<vmem>>, vector<64x256xf32>
      tpu.vector_store %arg7[%c0_16, %c0_17], %25 {strides = array<i32>} : memref<64x256xf32, #tpu.memory_space<vmem>>, vector<64x256xf32>,
    } else {
    }
    %c1_i32 = arith.constant 1 : i32
    %21 = arith.cmpi eq, %arg1, %c1_i32 : i32
    %22 = arith.extui %21 : i1 to i32
    %c0_i32_13 = arith.constant 0 : i32
    %23 = arith.cmpi ne, %22, %c0_i32_13 : i32
    scf.if %23 {
      %c0_14 = arith.constant 0 : index
      %c0_15 = arith.constant 0 : index
      %24 = vector.load %arg7[%c0_14, %c0_15] : memref<64x256xf32, #tpu.memory_space<vmem>>, vector<64x256xf32>
      %25 = arith.truncf %24 : vector<64x256xf32> to vector<64x256xbf16>
      %c0_16 = arith.constant 0 : index
      %c0_17 = arith.constant 0 : index
      %26 = vector.load %arg6[%c0_16, %c0_17] : memref<64x256xbf16, #tpu.memory_space<vmem>>, vector<64x256xbf16>
      tpu.vector_store %arg6[%c0_16, %c0_17], %25 {strides = array<i32>} : memref<64x256xbf16, #tpu.memory_space<vmem>>, vector<64x256xbf16>,
    } else {
    }
    return
  }
  func.func @transform_0(%arg0: i32, %arg1: i32) -> (i32, i32) {
    %c0_i32 = arith.constant 0 : i32
    %c0_i32_0 = arith.constant 0 : i32
    return %arg0, %c0_i32 : i32, i32
  }
  func.func @transform_1(%arg0: i32, %arg1: i32) -> (i32, i32) {
    %c0_i32 = arith.constant 0 : i32
    %c0_i32_0 = arith.constant 0 : i32
    return %c0_i32, %arg1 : i32, i32
  }
  func.func @transform_2(%arg0: i32, %arg1: i32) -> (i32, i32) {
    %c0_i32 = arith.constant 0 : i32
    %c0_i32_0 = arith.constant 0 : i32
    return %c0_i32, %arg1 : i32, i32
  }
  func.func @transform_3(%arg0: i32, %arg1: i32) -> (i32, i32) {
    %c0_i32 = arith.constant 0 : i32
    %c0_i32_0 = arith.constant 0 : i32
    return %arg1, %c0_i32 : i32, i32
  }
  func.func @transform_4(%arg0: i32, %arg1: i32) -> (i32, i32) {
    %c0_i32 = arith.constant 0 : i32
    %c0_i32_0 = arith.constant 0 : i32
    return %arg0, %c0_i32 : i32, i32
  }
}

</mosaic_0001>

<bundles_post_ra>
// kernel: mlp_forward.1
= control target key start
LH: loop header
LB: loop body
LE: loop exit
PB: predicated region body
PF: predicated region fallthrough
CT: control target
= control target key end

     0   :  { %s4245_s0 = inlined_call_operand.vmem [shape: bf16[128,256], index: 0, kind: input, shape index: {}]   ;;  %s4246_s1 = inlined_call_operand.hbm [shape: bf16[256,1024], index: 1, kind: input, shape index: {}]   ;;  %s4247_s2 = inlined_call_operand.hbm [shape: bf16[256,1024], index: 2, kind: input, shape index: {}]   ;;  %s4248_s3 = inlined_call_operand.hbm [shape: bf16[1024,256], index: 3, kind: input, shape index: {}]   ;;  %s4249_s4 = inlined_call_operand.vmem [shape: bf16[128,256], index: 4, kind: output, shape index: {}]  }
   0x1   :  { %4256 = sst [smem:[#allocation11_spill]] %s4246_s1 }
   0x2   :  { %4257 = sst [smem:[#allocation12_spill]] %s4247_s2 }
   0x3   :  { %9 = vsyncpa [#allocation4], 0 }
   0x4   :  { %11 = vsyncpa [#allocation4 + $0x1], 0 }
   0x5   :  { %12 = vsyncpa [#allocation6], 0 }
   0x6   :  { %14 = vsyncpa [#allocation6 + $0x1], 0  ;;  %s3541_s15 = smov 0   ;;  %s3543_s16 = smov 0  }
   0x7   :  { %s3545_s17 = smov 0   ;;  %s3547_s18 = smov 0  }
   0x8   :  { %s3549_s19 = smov 0   ;;  %s3551_s20 = smov 0  }
   0x9   :  { %s3553_s21 = smov 0   ;;  %s3555_s22 = smov 0  }
   0xa LB: > { %s4250_s23 = sadd.s32 4294967295, %s3506_s22   ;;  %s29_s24 = sadd.s32 1, %s3498_s20  ;;  %s3506_s22 = sphi %s3555_s22, %s20_s22   ;;  %s3502_s21 = sphi %s3553_s21, %s4281_s21   ;;  %s3498_s20 = sphi %s3551_s20, %s4280_s20   ;;  %s3494_s19 = sphi %s3549_s19, %s4279_s19   ;;  %s3490_s18 = sphi %s3547_s18, %s4278_s18   ;;  %s3486_s17 = sphi %s3545_s17, %s4277_s17   ;;  %s3482_s16 = sphi %s3543_s16, %s4276_s16   ;;  %s3478_s15 = sphi %s3541_s15, %s4275_s15  }
   0xb   : > { %p30_p0 = scmp.ge.s32.totalorder %s29_s24, 2  ;;  %s32_s25 = sadd.s32 1, %s3502_s21 }
   0xc   : > { %s65_s26 = sadd.s32 1, %s3486_s17  ;;  %p72_p1 = scmp.ne.s32.totalorder %s3486_s17, %s3482_s16 }
   0xd   : > { %s4283_s24 = smov (%p30_p0, %s29_s24), 0  ;;  %s4285_s25 = smov (!%p30_p0, %s32_s25), %s3502_s21 }
   0xe   : > { %s62_s27 = ssub.s32 %s3498_s20, %s4283_s24  ;;  %p73_p2 = scmp.eq.s32.totalorder %s3506_s22, 0 }
   0xf   : > { %p34_p3 = scmp.ge.s32.totalorder %s4285_s25, 2  ;;  %p63_p4 = scmp.eq.s32.totalorder %s62_s27, 0 }
  0x10   : > { %p74_p5 = por %p73_p2, %p72_p1  ;;  %p78_p6 = scmp.ne.s32.totalorder %s3482_s16, %s3478_s15 }
  0x11   : > { %s4287_s25 = smov (%p34_p3, %s4285_s25), 0  ;;  %p79_p7 = scmp.eq.s32.totalorder %s4250_s23, 0 }
  0x12   : > { %4258 = sst [smem:[#allocation10_spill]] %s4287_s25  ;;  %p2848_p8 = scmp.lt.s32.totalorder %s3506_s22, 4 }
  0x13   : > { %s3595_s28 = scalar_select %p63_p4, %s3486_s17, %s65_s26  }
  0x14   : > { %s4252_s29 = sand.u32 1, %s3486_s17   ;;  %p3601_p9 = por %p79_p7, %p78_p6 }
  0x15   : > { %s3607_s5 = sshll.u32 %s4252_s29, 9  ;;  %s2802_s6 = sshll.u32 %s3498_s20, 8 }
  0x16   : > { %s4259_s30 = scalar_select %p3601_p9, 1, 0 }
  0x17   : > { %p3610_p10 = pnand %p2848_p8, %p74_p5  ;;  %s211_s8 = sand.u32 1, %s3506_s22  }
  0x18   : > { %s4261_s2 = sld [smem:[#allocation12_spill]]  ;;  %s215_s12 = scalar_lea.vmem [#allocation5], %s3607_s5 }
  0x19   : > { %s222_s13 = sshll.u32 %s215_s12, 4  ;;  %s3627_s14 = scalar_lea.sflag [#allocation6], %s211_s8  ;;  %s3624_s13 = int_to_ptr.vmem [resolvable:$true] %s222_s13 }
  0x1a   : > { %p3633_p0 = pneg %p3610_p10 }
  0x1e   : > { %s3620_s11 = scalar_lea.hbm %s4261_s2, %s2802_s6  ;;  %s3351_s10 = scalar_lea.hbm %s4261_s2, 16384 }
  0x1f   : > { %s3346_s15 = scalar_lea.hbm %s3620_s11, 8192  ;;  %p3352_p3 = scmp.lt.u32.totalorder %s3620_s11, %s4261_s2 }
  0x20   : > { %p3347_p13 = scmp.ne.s32.totalorder %s3620_s11, %s3346_s15  ;;  %p3353_p4 = scmp.lt.u32.totalorder %s3351_s10, %s3346_s15 }
  0x21   : > { %p3355_p6 = scmp.lt.u32.totalorder %s3346_s15, %s3620_s11 }
  0x22   : > { %p3349_p1 = pnand %p3633_p0, %p3347_p13  ;;  %p3354_p5 = por %p3353_p4, %p3352_p3 }
  0x24   : > { %p3350_p2 = pneg %p3349_p1  ;;  %p3356_p7 = por %p3355_p6, %p3354_p5 }
  0x26   : > { %p3357_p8 = pnand %p3356_p7, %p3350_p2 }
  0x28   : > { %3360 = shalt.err (!%p3357_p8)
}
  0x29   : > { %s3361_s8 = scalar_lea.vmem %s3624_s13, 8192  ;;  %s3508_s27 = smov [#allocation5]  }
  0x2a   : > { %p3362_p13 = scmp.ne.s32.totalorder %s3624_s13, %s3361_s8  ;;  %s3366_s9 = sshll.u32 %s3508_s27, 4  ;;  %s3367_s9 = int_to_ptr.vmem [resolvable:$false] %s3366_s9 }
  0x2b   : > { %s3368_s23 = scalar_lea.vmem %s3367_s9, 16384  ;;  %p3369_p12 = scmp.lt.s32.totalorder %s3624_s13, %s3367_s9 }
  0x2c   : > { %p3364_p1 = pnand %p3362_p13, %p3633_p0  ;;  %p3370_p9 = scmp.lt.s32.totalorder %s3368_s23, %s3361_s8 }
  0x2e   : > { %p3365_p11 = pneg %p3364_p1  ;;  %p3371_p3 = por %p3370_p9, %p3369_p12 }
  0x30   : > { %p3372_p4 = pnand %p3371_p3, %p3365_p11 }
  0x32   : > { %3375 = shalt.err (!%p3372_p4)
}
  0x33   : > { %s4253_s15 = smov 512   ;;  %s4254_s10 = smov 256  }
  0x34   : > { %s4255_s12 = smov 16   ;;  %p4263_p9 = scmp.lt.s32.totalorder %s3506_s22, 5 }
  0x35   : > { %2844 = dma.hbm_to_vmem [thread:$0]  (!%p3610_p10), %s3620_s11, 8192, %s3624_s13, %s3627_s14, %s4253_s15, %s4254_s10, %s4255_s12  }
  0x36   : > { %p4264_p11 = scmp.ge.s32.totalorder %s3506_s22, 1  ;;  %s4266_s1 = sld [smem:[#allocation11_spill]] }
  0x37   : > { %s194_s29 = scalar_lea.vmem [#allocation3], %s3607_s5  ;;  %s2805_s11 = sshll.u32 %s3498_s20, 13 }
  0x38   : > { %p3664_p12 = pnand %p4264_p11, %p4263_p9  ;;  %s201_s2 = sshll.u32 %s194_s29, 4  ;;  %s3676_s2 = int_to_ptr.vmem [resolvable:$true] %s201_s2 }
  0x39   : > { %s4267_s13 = sand.u32 1, %s3486_s17  }
  0x3a   : > { %s4265_s8 = scalar_select %p3664_p12, 1, 0 }
  0x3b   : > { %s3681_s15 = scalar_lea.sflag [#allocation4], %s4267_s13 }
  0x3c   : > { %s3673_s23 = scalar_lea.hbm %s4266_s1, %s2802_s6  ;;  %s3381_s9 = scalar_lea.hbm %s4266_s1, 16384 }
  0x3d   : > { %s3376_s10 = scalar_lea.hbm %s3673_s23, 8192  ;;  %p3382_p7 = scmp.lt.u32.totalorder %s3673_s23, %s4266_s1 }
  0x3e   : > { %p3377_p2 = scmp.ne.s32.totalorder %s3673_s23, %s3376_s10  ;;  %p3383_p8 = scmp.lt.u32.totalorder %s3381_s9, %s3376_s10 }
  0x3f   : > { %p3385_p1 = scmp.lt.u32.totalorder %s3376_s10, %s3673_s23 }
  0x40   : > { %p3379_p5 = pnand %p3377_p2, %p3633_p0  ;;  %p3384_p13 = por %p3383_p8, %p3382_p7 }
  0x42   : > { %p3380_p6 = pneg %p3379_p5  ;;  %p3386_p3 = por %p3385_p1, %p3384_p13 }
  0x44   : > { %p3387_p4 = pnand %p3386_p3, %p3380_p6 }
  0x46   : > { %3390 = shalt.err (!%p3387_p4)
}
  0x47   : > { %s3391_s29 = scalar_lea.vmem %s3676_s2, 8192  ;;  %s3512_s13 = smov [#allocation3]  }
  0x48   : > { %p3392_p9 = scmp.ne.s32.totalorder %s3676_s2, %s3391_s29  ;;  %s3396_s27 = sshll.u32 %s3512_s13, 4  ;;  %s3397_s27 = int_to_ptr.vmem [resolvable:$false] %s3396_s27 }
  0x49   : > { %s3398_s25 = scalar_lea.vmem %s3397_s27, 16384  ;;  %p3399_p5 = scmp.lt.s32.totalorder %s3676_s2, %s3397_s27 }
  0x4a   : > { %p3394_p11 = pnand %p3392_p9, %p3633_p0  ;;  %p3400_p12 = scmp.lt.s32.totalorder %s3398_s25, %s3391_s29 }
  0x4c   : > { %p3395_p2 = pneg %p3394_p11  ;;  %p3401_p7 = por %p3400_p12, %p3399_p5 }
  0x4e   : > { %p3402_p8 = pnand %p3401_p7, %p3395_p2 }
  0x50   : > { %3405 = shalt.err (!%p3402_p8)
}
  0x51   : > { %s4268_s10 = smov 16   ;;  %s4269_s12 = smov 256  }
  0x52   : > { %s4270_s6 = smov 512   ;;  %s3713_s29 = scalar_lea.hbm %s4248_s3, %s2805_s11 }
  0x53   : > { %2841 = dma.hbm_to_vmem [thread:$0]  (!%p3610_p10), %s3673_s23, 8192, %s3676_s2, %s3681_s15, %s4270_s6, %s4269_s12, %s4268_s10  }
  0x54   : > { %s236_s27 = scalar_lea.vmem [#allocation7], %s3607_s5  ;;  %s3406_s1 = scalar_lea.hbm %s3713_s29, 8192 }
  0x55   : > { %s244_s25 = sshll.u32 %s236_s27, 4  ;;  %p3407_p12 = scmp.ne.s32.totalorder %s3713_s29, %s3406_s1  ;;  %s3716_s25 = int_to_ptr.vmem [resolvable:$true] %s244_s25 }
  0x56   : > { %s3411_s23 = scalar_lea.hbm %s4248_s3, 16384  ;;  %p3412_p1 = scmp.lt.u32.totalorder %s3713_s29, %s4248_s3 }
  0x57   : > { %p3409_p6 = pnand %p3407_p12, %p3633_p0  ;;  %p3413_p3 = scmp.lt.u32.totalorder %s3411_s23, %s3406_s1 }
  0x58   : > { %p3415_p9 = scmp.lt.u32.totalorder %s3406_s1, %s3713_s29 }
  0x59   : > { %p3410_p13 = pneg %p3409_p6  ;;  %p3414_p4 = por %p3413_p3, %p3412_p1 }
  0x5b   : > { %p3416_p11 = por %p3415_p9, %p3414_p4 }
  0x5d   : > { %p3417_p2 = pnand %p3416_p11, %p3410_p13 }
  0x5f   : > { %3420 = shalt.err (!%p3417_p2)
}
  0x60   : > { %s3421_s5 = scalar_lea.vmem %s3716_s25, 8192  ;;  %s3513_s12 = smov [#allocation7]  }
  0x61   : > { %p3422_p5 = scmp.ne.s32.totalorder %s3716_s25, %s3421_s5  ;;  %s3426_s6 = sshll.u32 %s3513_s12, 4  ;;  %s3427_s6 = int_to_ptr.vmem [resolvable:$false] %s3426_s6 }
  0x62   : > { %s3428_s9 = scalar_lea.vmem %s3427_s6, 16384  ;;  %p3429_p12 = scmp.lt.s32.totalorder %s3716_s25, %s3427_s6 }
  0x63   : > { %p3424_p7 = pnand %p3422_p5, %p3633_p0  ;;  %p3430_p6 = scmp.lt.s32.totalorder %s3428_s9, %s3421_s5 }
  0x65   : > { %p3425_p8 = pneg %p3424_p7  ;;  %p3431_p1 = por %p3430_p6, %p3429_p12 }
  0x67   : > { %p3432_p3 = pnand %p3431_p1, %p3425_p8 }
  0x69   : > { %3435 = shalt.err (!%p3432_p3)
}
  0x6a   : > { %s3514_s1 = smov 128   ;;  %s3515_s13 = smov 8  }
  0x6b   : > { %2847 = dma.hbm_to_vmem [thread:$0]  (!%p3610_p10), %s3713_s29, 8192, %s3716_s25, %s3627_s14, %s3514_s1, %s3514_s1, %s3515_s13  }
  0x6c   : > { %p4271_p0 = scmp.ne.s32.totalorder %s4265_s8, 0 }
  0x6d   : > { %s258_s26 = sand.u32 (!%p4271_p0), 1, %s3482_s16   ;;  %p4272_p13 = scmp.ne.s32.totalorder (!%p4271_p0), %s4259_s30, 0 }
  0x6e   : > { %256 = sbr.rel (%p4271_p0) target bundleno = 799 (0x31f), region = 36  ;;  %s3743_s27 = sshll.u32 (!%p4271_p0), %s258_s26, 9 }
  0x6f   : > { %s259_s2 = scalar_lea.sflag (!%p4271_p0), [#allocation4], %s258_s26  ;;  %s3746_s15 = scalar_lea.vmem (!%p4271_p0), [#allocation3], %s3743_s27 }
  0x75   : > { %3469 = dma.done.wait (%p4272_p13), %s259_s2, 8192  }
  0x76   : > { %3471 = vsyncadd (%p4272_p13), %s259_s2, 4294959104  ;;  %s4273_s7 = sadd.s32 4294967295, %s3506_s22   ;;  %s3755_s29 = scalar_lea.vmem [#allocation5], %s3743_s27 }
  0x77   : > { %s267_s14 = sand.u32 1, %s4273_s7  }
  0x78   : > { %s268_s8 = scalar_lea.sflag [#allocation6], %s267_s14 }
  0x79   : > { %3473 = dma.done.wait (%p4272_p13), %s268_s8, 16384  }
  0x7a   : > { %3475 = vsyncadd (%p4272_p13), %s268_s8, 4294950912  ;;  %s2551_s25 = sshll.u32 %s3494_s19, 3  ;;  %v2918_v0 = vld [vmem:[%s3746_s15 + $0x4] ss:$16 sps:$4 sm:$0xff]   ;;  %v2920_v1 = vld [vmem:[%s3746_s15] ss:$16 sps:$4 sm:$0xff]  }
  0x7b   : > { %p323_p10 = scmp.lt.s32.totalorder %s2551_s25, 15  ;;  %771 = vmatprep.subr.bf16.mxu1 %v2918_v0  ;;  %v2921_v2 = vld [vmem:[%s3746_s15 + $0x24] ss:$16 sps:$4 sm:$0xff]   ;;  %v2923_v3 = vld [vmem:[%s3746_s15 + $0x20] ss:$16 sps:$4 sm:$0xff]   ;;  %s3899_s6 = scalar_lea.vmem [#allocation7], %s3743_s27 }
  0x7c   : > { %772 = vmatpush1.bf16.msra.mxu1 %v2920_v1  ;;  %v2924_v4 = vld [vmem:[%s3746_s15 + $0x44] ss:$16 sps:$4 sm:$0xff]   ;;  %v2926_v5 = vld [vmem:[%s3746_s15 + $0x40] ss:$16 sps:$4 sm:$0xff]   ;;  %v2998_v60 = vld [vmem:[%s3746_s15 + $0xc] ss:$16 sps:$4 sm:$0xff]  }
  0x7d   : > { %s4289_s25 = smov (!%p323_p10, %s2551_s25), 15  ;;  %773 = vmatprep.subr.bf16.mxu1 %v2921_v2  ;;  %v2927_v6 = vld [vmem:[%s3746_s15 + $0x64] ss:$16 sps:$4 sm:$0xff]   ;;  %v2929_v7 = vld [vmem:[%s3746_s15 + $0x60] ss:$16 sps:$4 sm:$0xff]   ;;  %p2789_p4 = scmp.ne.s32.totalorder %s3490_s18, 0 }
  0x7e   : > { %s2806_s23 = sshll.u32 %s4289_s25, 3  ;;  %v2941_v8 = vld [vmem:[%s3755_s29 + $0x4] ss:$16 sps:$4 sm:$0xff]   ;;  %v2944_v9 = vld [vmem:[%s3755_s29] ss:$16 sps:$4 sm:$0xff]  }
  0x7f   : > { %s3770_s11 = scalar_lea.vmem %s4249_s4, %s2806_s23  ;;  %v2930_v10 = vld [vmem:[%s3746_s15 + $0x84] ss:$16 sps:$4 sm:$0xff]   ;;  %1301 = vmatprep.subr.bf16.mxu0 %v2941_v8  ;;  %v2950_v12 = vld [vmem:[%s3755_s29 + $0x20] ss:$16 sps:$4 sm:$0xff]   ;;  %s3808_s12 = scalar_lea.vmem %s4245_s0, %s2806_s23  ;;  %v2996_v62 = vld [vmem:[%s3746_s15 + $0x8] ss:$16 sps:$4 sm:$0xff]  }
  0x80   : > { %774 = vmatpush1.bf16.msra.mxu1 %v2923_v3  ;;  %v2947_v11 = vld [vmem:[%s3755_s29 + $0x24] ss:$16 sps:$4 sm:$0xff]   ;;  %1302 = vmatpush1.bf16.msra.mxu0 %v2944_v9  ;;  %v2932_v13 = vld [vmem:[%s3746_s15 + $0x80] ss:$16 sps:$4 sm:$0xff]   ;;  %v3004_v0 = vld [vmem:[%s3746_s15 + $0x2c] ss:$16 sps:$4 sm:$0xff]  }
  0x81   : > { %775 = vmatprep.subr.bf16.mxu1 %v2924_v4  ;;  %1303 = vmatprep.subr.bf16.mxu0 %v2947_v11  ;;  %v2933_v14 = vld [vmem:[%s3746_s15 + $0xa4] ss:$16 sps:$4 sm:$0xff]   ;;  %v2956_v16 = vld [vmem:[%s3755_s29 + $0x40] ss:$16 sps:$4 sm:$0xff]   ;;  %v3002_v4 = vld [vmem:[%s3746_s15 + $0x28] ss:$16 sps:$4 sm:$0xff]  }
  0x82   : > { %v2953_v15 = vld [vmem:[%s3755_s29 + $0x44] ss:$16 sps:$4 sm:$0xff]   ;;  %v2935_v17 = vld [vmem:[%s3746_s15 + $0xa0] ss:$16 sps:$4 sm:$0xff]   ;;  %v3008_v9 = vld [vmem:[%s3746_s15 + $0x48] ss:$16 sps:$4 sm:$0xff]  }
  0x83   : > { %v2959_v18 = vld [vmem:[%s3755_s29 + $0x64] ss:$16 sps:$4 sm:$0xff]   ;;  %v2938_v20 = vld [vmem:[%s3746_s15 + $0xc0] ss:$16 sps:$4 sm:$0xff]   ;;  %v3019_v11 = vld [vmem:[%s3746_s15 + $0x6c] ss:$16 sps:$4 sm:$0xff]  }
  0x84   : > { %776 = vmatpush1.bf16.msra.mxu1 %v2926_v5  ;;  %1304 = vmatpush1.bf16.msra.mxu0 %v2950_v12  ;;  %v2936_v19 = vld [vmem:[%s3746_s15 + $0xc4] ss:$16 sps:$4 sm:$0xff]   ;;  %v2962_v21 = vld [vmem:[%s3755_s29 + $0x60] ss:$16 sps:$4 sm:$0xff]   ;;  %v3017_v12 = vld [vmem:[%s3746_s15 + $0x68] ss:$16 sps:$4 sm:$0xff]  }
  0x85   : > { %777 = vmatprep.subr.bf16.mxu1 %v2927_v6  ;;  %1305 = vmatprep.subr.bf16.mxu0 %v2953_v15  ;;  %v2965_v22 = vld [vmem:[%s3755_s29 + $0x84] ss:$16 sps:$4 sm:$0xff]   ;;  %v2968_v24 = vld [vmem:[%s3755_s29 + $0x80] ss:$16 sps:$4 sm:$0xff]   ;;  %v3010_v6 = vld [vmem:[%s3746_s15 + $0x4c] ss:$16 sps:$4 sm:$0xff]  }
  0x86   : > { %v2939_v23 = vld [vmem:[%s3746_s15 + $0xe4] ss:$16 sps:$4 sm:$0xff]   ;;  %v2943_v25 = vld [vmem:[%s3746_s15 + $0xe0] ss:$16 sps:$4 sm:$0xff]   ;;  %v3023_v15 = vld [vmem:[%s3746_s15 + $0x88] ss:$16 sps:$4 sm:$0xff]  }
  0x87   : > { %v2971_v26 = vld [vmem:[%s3755_s29 + $0xa4] ss:$16 sps:$4 sm:$0xff]   ;;  %v2949_v28 = vld [vmem:[%s3746_s15 + $0x100] ss:$16 sps:$4 sm:$0xff]  }
  0x88   : > { %778 = vmatpush1.bf16.msra.mxu1 %v2929_v7  ;;  %1306 = vmatpush1.bf16.msra.mxu0 %v2956_v16  ;;  %v2945_v27 = vld [vmem:[%s3746_s15 + $0x104] ss:$16 sps:$4 sm:$0xff]   ;;  %v2974_v29 = vld [vmem:[%s3755_s29 + $0xa0] ss:$16 sps:$4 sm:$0xff]  }
  0x89   : > { %779 = vmatprep.subr.bf16.mxu1 %v2930_v10  ;;  %1307 = vmatprep.subr.bf16.mxu0 %v2959_v18  ;;  %v2977_v30 = vld [vmem:[%s3755_s29 + $0xc4] ss:$16 sps:$4 sm:$0xff]   ;;  %v2980_v32 = vld [vmem:[%s3755_s29 + $0xc0] ss:$16 sps:$4 sm:$0xff]   ;;  %v3032_v18 = vld [vmem:[%s3746_s15 + $0xa8] ss:$16 sps:$4 sm:$0xff]  }
  0x8a   : > { %v2951_v31 = vld [vmem:[%s3746_s15 + $0x124] ss:$16 sps:$4 sm:$0xff]   ;;  %v2955_v34 = vld [vmem:[%s3746_s15 + $0x120] ss:$16 sps:$4 sm:$0xff]  }
  0x8b   : > { %v3813_v33 = vld [vmem:[%s3808_s12 + $0x4] ss:$8 sps:$4 sm:$0xff]   ;;  %v2986_v37 = vld [vmem:[%s3755_s29 + $0xe0] ss:$16 sps:$4 sm:$0xff]   ;;  %v3851_v1 = vld [vmem:[%s3808_s12 + $0x14] ss:$8 sps:$4 sm:$0xff]  }
  0x8c   : > { %780 = vmatpush1.bf16.msra.mxu1 %v2932_v13  ;;  %1308 = vmatpush1.bf16.msra.mxu0 %v2962_v21  ;;  %v2983_v35 = vld [vmem:[%s3755_s29 + $0xe4] ss:$16 sps:$4 sm:$0xff]   ;;  %v2961_v38 = vld [vmem:[%s3746_s15 + $0x140] ss:$16 sps:$4 sm:$0xff]   ;;  %v3025_v13 = vld [vmem:[%s3746_s15 + $0x8c] ss:$16 sps:$4 sm:$0xff]  }
  0x8d   : > { %781 = vmatprep.subr.bf16.mxu1 %v2933_v14  ;;  %1309 = vmatprep.subr.bf16.mxu0 %v2965_v22  ;;  %v2957_v36 = vld [vmem:[%s3746_s15 + $0x144] ss:$16 sps:$4 sm:$0xff]   ;;  %v2992_v41 = vld [vmem:[%s3755_s29 + $0x100] ss:$16 sps:$4 sm:$0xff]   ;;  %v3038_v21 = vld [vmem:[%s3746_s15 + $0xc8] ss:$16 sps:$4 sm:$0xff]  }
  0x8e   : > { %803 = vmatprep.mubr.bf16.mxu1 %v3813_v33  ;;  %1333 = vmatprep.mubr.bf16.mxu0 %v3813_v33  ;;  %v2989_v39 = vld [vmem:[%s3755_s29 + $0x104] ss:$16 sps:$4 sm:$0xff]   ;;  %v2967_v42 = vld [vmem:[%s3746_s15 + $0x160] ss:$16 sps:$4 sm:$0xff]   ;;  %v3049_v22 = vld [vmem:[%s3746_s15 + $0xec] ss:$16 sps:$4 sm:$0xff]  }
  0x8f   : > { %v2963_v40 = vld [vmem:[%s3746_s15 + $0x164] ss:$16 sps:$4 sm:$0xff]   ;;  %v3001_v45 = vld [vmem:[%s3755_s29 + $0x120] ss:$16 sps:$4 sm:$0xff]  }
  0x90   : > { %782 = vmatpush1.bf16.msra.mxu1 %v2935_v17  ;;  %1310 = vmatpush1.bf16.msra.mxu0 %v2968_v24  ;;  %v2999_v43 = vld [vmem:[%s3755_s29 + $0x124] ss:$16 sps:$4 sm:$0xff]   ;;  %v2973_v46 = vld [vmem:[%s3746_s15 + $0x180] ss:$16 sps:$4 sm:$0xff]   ;;  %v3034_v17 = vld [vmem:[%s3746_s15 + $0xac] ss:$16 sps:$4 sm:$0xff]  }
  0x91   : > { %783 = vmatprep.subr.bf16.mxu1 %v2936_v19  ;;  %1311 = vmatprep.subr.bf16.mxu0 %v2971_v26  ;;  %v2969_v44 = vld [vmem:[%s3746_s15 + $0x184] ss:$16 sps:$4 sm:$0xff]   ;;  %v3007_v49 = vld [vmem:[%s3755_s29 + $0x140] ss:$16 sps:$4 sm:$0xff]   ;;  %v3040_v19 = vld [vmem:[%s3746_s15 + $0xcc] ss:$16 sps:$4 sm:$0xff]  }
  0x92   : > { %v3005_v47 = vld [vmem:[%s3755_s29 + $0x144] ss:$16 sps:$4 sm:$0xff]   ;;  %v2979_v50 = vld [vmem:[%s3746_s15 + $0x1a0] ss:$16 sps:$4 sm:$0xff]   ;;  %v3052_v24 = vld [vmem:[%s3746_s15 + $0x10c] ss:$16 sps:$4 sm:$0xff]  }
  0x93   : > { %v2975_v48 = vld [vmem:[%s3746_s15 + $0x1a4] ss:$16 sps:$4 sm:$0xff]   ;;  %v3013_v53 = vld [vmem:[%s3755_s29 + $0x160] ss:$16 sps:$4 sm:$0xff]  }
  0x94   : > { %784 = vmatpush1.bf16.msra.mxu1 %v2938_v20  ;;  %1312 = vmatpush1.bf16.msra.mxu0 %v2974_v29  ;;  %v3011_v51 = vld [vmem:[%s3755_s29 + $0x164] ss:$16 sps:$4 sm:$0xff]   ;;  %v2985_v54 = vld [vmem:[%s3746_s15 + $0x1c0] ss:$16 sps:$4 sm:$0xff]   ;;  %v3055_v29 = vld [vmem:[%s3746_s15 + $0x12c] ss:$16 sps:$4 sm:$0xff]  }
  0x95   : > { %785 = vmatprep.subr.bf16.mxu1 %v2939_v23  ;;  %1313 = vmatprep.subr.bf16.mxu0 %v2977_v30  ;;  %v2981_v52 = vld [vmem:[%s3746_s15 + $0x1c4] ss:$16 sps:$4 sm:$0xff]   ;;  %v3022_v57 = vld [vmem:[%s3755_s29 + $0x180] ss:$16 sps:$4 sm:$0xff]   ;;  %v3047_v23 = vld [vmem:[%s3746_s15 + $0xe8] ss:$16 sps:$4 sm:$0xff]  }
  0x96   : > { %v3020_v55 = vld [vmem:[%s3755_s29 + $0x184] ss:$16 sps:$4 sm:$0xff]   ;;  %v2991_v58 = vld [vmem:[%s3746_s15 + $0x1e0] ss:$16 sps:$4 sm:$0xff]  }
  0x97   : > { %v2987_v56 = vld [vmem:[%s3746_s15 + $0x1e4] ss:$16 sps:$4 sm:$0xff]   ;;  %v3845_v61 = vld [vmem:[%s3808_s12] ss:$8 sps:$4 sm:$0xff]   ;;  %v3861_v7 = vld [vmem:[%s3808_s12 + $0x10] ss:$8 sps:$4 sm:$0xff]  }
  0x98   : > { %786 = vmatpush1.bf16.msra.mxu1 %v2943_v25  ;;  %1314 = vmatpush1.bf16.msra.mxu0 %v2980_v32  ;;  %v3026_v59 = vld [vmem:[%s3755_s29 + $0x1a4] ss:$16 sps:$4 sm:$0xff]   ;;  %v3028_v63 = vld [vmem:[%s3755_s29 + $0x1a0] ss:$16 sps:$4 sm:$0xff]   ;;  %v3053_v32 = vld [vmem:[%s3746_s15 + $0x128] ss:$16 sps:$4 sm:$0xff]  }
  0x99   : > { %787 = vmatprep.subr.bf16.mxu1 %v2945_v27  ;;  %1315 = vmatprep.subr.bf16.mxu0 %v2983_v35  ;;  %v3035_v2 = vld [vmem:[%s3755_s29 + $0x1c4] ss:$16 sps:$4 sm:$0xff]   ;;  %v3037_v3 = vld [vmem:[%s3755_s29 + $0x1c0] ss:$16 sps:$4 sm:$0xff]  }
  0x9a   : > { %v3041_v5 = vld [vmem:[%s3755_s29 + $0x1e4] ss:$16 sps:$4 sm:$0xff]   ;;  %v3043_v8 = vld [vmem:[%s3755_s29 + $0x1e0] ss:$16 sps:$4 sm:$0xff]  }
  0x9b   : > { %v3866_v10 = vld [vmem:[%s3808_s12 + $0x24] ss:$8 sps:$4 sm:$0xff]   ;;  %v3875_v14 = vld [vmem:[%s3808_s12 + $0x20] ss:$8 sps:$4 sm:$0xff]   ;;  %v3880_v16 = vld [vmem:[%s3808_s12 + $0x34] ss:$8 sps:$4 sm:$0xff]  }
  0x9c   : > { %788 = vmatpush1.bf16.msra.mxu1 %v2949_v28  ;;  %1316 = vmatpush1.bf16.msra.mxu0 %v2986_v37  ;;  %v3889_v20 = vld [vmem:[%s3808_s12 + $0x30] ss:$8 sps:$4 sm:$0xff]   ;;  %v3122_v25 = vld [vmem:[%s3899_s6] ss:$8 sps:$4 sm:$0xff]   ;;  %v3124_v26 = vld [vmem:[%s3899_s6 + $0x4] ss:$8 sps:$4 sm:$0xff]  }
  0x9d   : > { %789 = vmatprep.subr.bf16.mxu1 %v2951_v31  ;;  %1317 = vmatprep.subr.bf16.mxu0 %v2989_v39  ;;  %v3127_v27 = vld [vmem:[%s3899_s6 + $0x14] ss:$8 sps:$4 sm:$0xff]   ;;  %v3050_v28 = vld [vmem:[%s3746_s15 + $0x108] ss:$16 sps:$4 sm:$0xff]   ;;  %v3130_v31 = vld [vmem:[%s3899_s6 + $0x24] ss:$8 sps:$4 sm:$0xff]  }
  0x9e   : > { %v3125_v30 = vld [vmem:[%s3899_s6 + $0x10] ss:$8 sps:$4 sm:$0xff]   ;;  %v3128_v35 = vld [vmem:[%s3899_s6 + $0x20] ss:$8 sps:$4 sm:$0xff]   ;;  %v3061_v39 = vld [vmem:[%s3746_s15 + $0x16c] ss:$16 sps:$4 sm:$0xff]  }
  0x9f   : > { %v3056_v37 = vld [vmem:[%s3746_s15 + $0x148] ss:$16 sps:$4 sm:$0xff]  }
  0xa0   : > { %790 = vmatpush1.bf16.msra.mxu1 %v2955_v34  ;;  %1318 = vmatpush1.bf16.msra.mxu0 %v2992_v41  ;;  %v3058_v34 = vld [vmem:[%s3746_s15 + $0x14c] ss:$16 sps:$4 sm:$0xff]   ;;  %v3059_v41 = vld [vmem:[%s3746_s15 + $0x168] ss:$16 sps:$4 sm:$0xff]  }
  0xa1   : > { %791 = vmatprep.subr.bf16.mxu1 %v2957_v36  ;;  %1319 = vmatprep.subr.bf16.mxu0 %v2999_v43  ;;  %v3133_v36 = vld [vmem:[%s3899_s6 + $0x34] ss:$8 sps:$4 sm:$0xff]  }
  0xa2   : > { %v3064_v43 = vld [vmem:[%s3746_s15 + $0x18c] ss:$16 sps:$4 sm:$0xff]  }
  0xa4   : > { %792 = vmatpush1.bf16.msra.mxu1 %v2961_v38  ;;  %1320 = vmatpush1.bf16.msra.mxu0 %v3001_v45  ;;  %v3131_v38 = vld [vmem:[%s3899_s6 + $0x30] ss:$8 sps:$4 sm:$0xff]  }
  0xa5   : > { %793 = vmatprep.subr.bf16.mxu1 %v2963_v40  ;;  %1321 = vmatprep.subr.bf16.mxu0 %v3005_v47  ;;  %v3136_v40 = vld [vmem:[%s3899_s6 + $0x44] ss:$8 sps:$4 sm:$0xff]   ;;  %v3062_v45 = vld [vmem:[%s3746_s15 + $0x188] ss:$16 sps:$4 sm:$0xff]  }
  0xa6   : > { %v3067_v47 = vld [vmem:[%s3746_s15 + $0x1ac] ss:$16 sps:$4 sm:$0xff]  }
  0xa8   : > { %794 = vmatpush1.bf16.msra.mxu1 %v2967_v42  ;;  %1322 = vmatpush1.bf16.msra.mxu0 %v3007_v49  ;;  %v3134_v42 = vld [vmem:[%s3899_s6 + $0x40] ss:$8 sps:$4 sm:$0xff]  }
  0xa9   : > { %795 = vmatprep.subr.bf16.mxu1 %v2969_v44  ;;  %1323 = vmatprep.subr.bf16.mxu0 %v3011_v51  ;;  %v3139_v44 = vld [vmem:[%s3899_s6 + $0x54] ss:$8 sps:$4 sm:$0xff]   ;;  %v3065_v49 = vld [vmem:[%s3746_s15 + $0x1a8] ss:$16 sps:$4 sm:$0xff]  }
  0xaa   : > { %v3070_v51 = vld [vmem:[%s3746_s15 + $0x1cc] ss:$16 sps:$4 sm:$0xff]  }
  0xac   : > { %796 = vmatpush1.bf16.msra.mxu1 %v2973_v46  ;;  %1324 = vmatpush1.bf16.msra.mxu0 %v3013_v53  ;;  %v3137_v46 = vld [vmem:[%s3899_s6 + $0x50] ss:$8 sps:$4 sm:$0xff]   ;;  %v3073_v53 = vld [vmem:[%s3746_s15 + $0x1ec] ss:$16 sps:$4 sm:$0xff]  }
  0xad   : > { %797 = vmatprep.subr.bf16.mxu1 %v2975_v48  ;;  %1325 = vmatprep.subr.bf16.mxu0 %v3020_v55  ;;  %v3142_v48 = vld [vmem:[%s3899_s6 + $0x64] ss:$8 sps:$4 sm:$0xff]  }
  0xae   : > { %v3076_v55 = vld [vmem:[%s3755_s29 + $0xc] ss:$16 sps:$4 sm:$0xff]  }
  0xb0   : > { %798 = vmatpush1.bf16.msra.mxu1 %v2979_v50  ;;  %1326 = vmatpush1.bf16.msra.mxu0 %v3022_v57  ;;  %v3140_v50 = vld [vmem:[%s3899_s6 + $0x60] ss:$8 sps:$4 sm:$0xff]   ;;  %v3079_v57 = vld [vmem:[%s3755_s29 + $0x2c] ss:$16 sps:$4 sm:$0xff]  }
  0xb1   : > { %799 = vmatprep.subr.bf16.mxu1 %v2981_v52  ;;  %1327 = vmatprep.subr.bf16.mxu0 %v3026_v59  ;;  %v3068_v52 = vld [vmem:[%s3746_s15 + $0x1c8] ss:$16 sps:$4 sm:$0xff]   ;;  %v3082_v59 = vld [vmem:[%s3755_s29 + $0x4c] ss:$16 sps:$4 sm:$0xff]  }
  0xb4   : > { %800 = vmatpush1.bf16.msra.mxu1 %v2985_v54  ;;  %1328 = vmatpush1.bf16.msra.mxu0 %v3028_v63  ;;  %v3071_v54 = vld [vmem:[%s3746_s15 + $0x1e8] ss:$16 sps:$4 sm:$0xff]  }
  0xb5   : > { %801 = vmatprep.subr.bf16.mxu1 %v2987_v56  ;;  %1329 = vmatprep.subr.bf16.mxu0 %v3035_v2  ;;  %v3074_v56 = vld [vmem:[%s3755_s29 + $0x8] ss:$16 sps:$4 sm:$0xff]  }
  0xb6   : > { %v3083_v63 = vld [vmem:[%s3755_s29 + $0x68] ss:$16 sps:$4 sm:$0xff]  }
  0xb7   : > { %v3086_v2 = vld [vmem:[%s3755_s29 + $0x88] ss:$16 sps:$4 sm:$0xff]  }
  0xb8   : > { %802 = vmatpush1.bf16.msra.mxu1 %v2991_v58  ;;  %1330 = vmatpush1.bf16.msra.mxu0 %v3037_v3  ;;  %v3077_v58 = vld [vmem:[%s3755_s29 + $0x28] ss:$16 sps:$4 sm:$0xff]   ;;  %v3091_v3 = vld [vmem:[%s3755_s29 + $0xac] ss:$16 sps:$4 sm:$0xff]  }
  0xb9   : > { %844 = vmatprep.subr.bf16.mxu1 %v2998_v60  ;;  %1331 = vmatprep.subr.bf16.mxu0 %v3041_v5  ;;  %v3080_v60 = vld [vmem:[%s3755_s29 + $0x48] ss:$16 sps:$4 sm:$0xff]   ;;  %v3094_v5 = vld [vmem:[%s3755_s29 + $0xcc] ss:$16 sps:$4 sm:$0xff]  }
  0xbb   : > { %804 = vmatmul.mubr.bf16.vlgmr.msra.gmra.mrb[0].mxu1 %v3845_v61 }
  0xbc   : > { %845 = vmatpush1.bf16.msra.mxu1 %v2996_v62  ;;  %813 = vmatprep.mubr.bf16.mxu1 %v3851_v1  ;;  %v3085_v62 = vld [vmem:[%s3755_s29 + $0x6c] ss:$16 sps:$4 sm:$0xff]  }
  0xbd   : > { %846 = vmatprep.subr.bf16.mxu1 %v3004_v0  ;;  %1332 = vmatpush1.bf16.msra.mxu0 %v3043_v8  ;;  %v3088_v0 = vld [vmem:[%s3755_s29 + $0x8c] ss:$16 sps:$4 sm:$0xff]   ;;  %v3143_v8 = vld [vmem:[%s3899_s6 + $0x70] ss:$8 sps:$4 sm:$0xff]  }
  0xbe   : > { %2103 = vmatprep.subr.bf16.mxu0 %v3124_v26  ;;  %v3157_v26 = vld [vmem:[%s3899_s6 + $0xb4] ss:$8 sps:$4 sm:$0xff]  }
  0xc0   : > { %847 = vmatpush1.bf16.msra.mxu1 %v3002_v4  ;;  %1334 = vmatmul.mubr.bf16.vlgmr.msra.gmra.mrb[0].mxu0 %v3845_v61  ;;  %v3089_v4 = vld [vmem:[%s3755_s29 + $0xa8] ss:$16 sps:$4 sm:$0xff]  }
  0xc1   : > { %848 = vmatprep.subr.bf16.mxu1 %v3010_v6  ;;  %1343 = vmatprep.mubr.bf16.mxu0 %v3851_v1  ;;  %v3145_v6 = vld [vmem:[%s3899_s6 + $0x74] ss:$8 sps:$4 sm:$0xff]  }
  0xc2   : > { %2104 = vmatpush1.bf16.msra.mxu0 %v3122_v25  ;;  %v3106_v25 = vld [vmem:[%s3755_s29 + $0x14c] ss:$16 sps:$4 sm:$0xff]  }
  0xc3   : > { %814 = vmatmul.mubr.bf16.gmra.mrb[4].mxu1 %v3861_v7  ;;  %2105 = vmatprep.subr.bf16.mxu0 %v3127_v27  ;;  %v3155_v27 = vld [vmem:[%s3899_s6 + $0xb0] ss:$8 sps:$4 sm:$0xff]  }
  0xc4   : > { %849 = vmatpush1.bf16.msra.mxu1 %v3008_v9  ;;  %823 = vmatprep.mubr.bf16.mxu1 %v3866_v10  ;;  %v3092_v9 = vld [vmem:[%s3755_s29 + $0xc8] ss:$16 sps:$4 sm:$0xff]  }
  0xc5   : > { %850 = vmatprep.subr.bf16.mxu1 %v3019_v11  ;;  %v3097_v11 = vld [vmem:[%s3755_s29 + $0xec] ss:$16 sps:$4 sm:$0xff]  }
  0xc6   : > { %2106 = vmatpush1.bf16.msra.mxu0 %v3125_v30  ;;  %v3160_v30 = vld [vmem:[%s3899_s6 + $0xc4] ss:$8 sps:$4 sm:$0xff]  }
  0xc7   : > { %2107 = vmatprep.subr.bf16.mxu0 %v3130_v31  ;;  %v3158_v31 = vld [vmem:[%s3899_s6 + $0xc0] ss:$8 sps:$4 sm:$0xff]  }
  0xc8   : > { %851 = vmatpush1.bf16.msra.mxu1 %v3017_v12  ;;  %1344 = vmatmul.mubr.bf16.gmra.mrb[4].mxu0 %v3861_v7  ;;  %v3148_v12 = vld [vmem:[%s3899_s6 + $0x84] ss:$8 sps:$4 sm:$0xff]  }
  0xc9   : > { %852 = vmatprep.subr.bf16.mxu1 %v3025_v13  ;;  %1353 = vmatprep.mubr.bf16.mxu0 %v3866_v10  ;;  %v3146_v13 = vld [vmem:[%s3899_s6 + $0x80] ss:$8 sps:$4 sm:$0xff]  }
  0xca   : > { %2108 = vmatpush1.bf16.msra.mxu0 %v3128_v35  ;;  %v3163_v35 = vld [vmem:[%s3899_s6 + $0xd4] ss:$8 sps:$4 sm:$0xff]  }
  0xcb   : > { %824 = vmatmul.mubr.bf16.gmra.mrb[8].mxu1 %v3875_v14  ;;  %2109 = vmatprep.subr.bf16.mxu0 %v3133_v36  ;;  %v3161_v36 = vld [vmem:[%s3899_s6 + $0xd0] ss:$8 sps:$4 sm:$0xff]  }
  0xcc   : > { %853 = vmatpush1.bf16.msra.mxu1 %v3023_v15  ;;  %833 = vmatprep.mubr.bf16.mxu1 %v3880_v16  ;;  %v3095_v15 = vld [vmem:[%s3755_s29 + $0xe8] ss:$16 sps:$4 sm:$0xff]  }
  0xcd   : > { %854 = vmatprep.subr.bf16.mxu1 %v3034_v17  ;;  %v3100_v17 = vld [vmem:[%s3755_s29 + $0x10c] ss:$16 sps:$4 sm:$0xff]  }
  0xce   : > { %2110 = vmatpush1.bf16.msra.mxu0 %v3131_v38  ;;  %v3115_v38 = vld [vmem:[%s3755_s29 + $0x1ac] ss:$16 sps:$4 sm:$0xff]  }
  0xcf   : > { %2111 = vmatprep.subr.bf16.mxu0 %v3136_v40  ;;  %v3164_v40 = vld [vmem:[%s3899_s6 + $0xe0] ss:$8 sps:$4 sm:$0xff]  }
  0xd0   : > { %855 = vmatpush1.bf16.msra.mxu1 %v3032_v18  ;;  %1354 = vmatmul.mubr.bf16.gmra.mrb[8].mxu0 %v3875_v14  ;;  %v3151_v18 = vld [vmem:[%s3899_s6 + $0x94] ss:$8 sps:$4 sm:$0xff]  }
  0xd1   : > { %856 = vmatprep.subr.bf16.mxu1 %v3040_v19  ;;  %1363 = vmatprep.mubr.bf16.mxu0 %v3880_v16  ;;  %v3149_v19 = vld [vmem:[%s3899_s6 + $0x90] ss:$8 sps:$4 sm:$0xff]  }
  0xd2   : > { %2112 = vmatpush1.bf16.msra.mxu0 %v3134_v42  ;;  %v3118_v42 = vld [vmem:[%s3755_s29 + $0x1cc] ss:$16 sps:$4 sm:$0xff]  }
  0xd3   : > { %834 = vmatmul.mubr.bf16.gmra.mrb[12].mxu1 %v3889_v20  ;;  %2113 = vmatprep.subr.bf16.mxu0 %v3139_v44  ;;  %v3167_v44 = vld [vmem:[%s3899_s6 + $0xf0] ss:$8 sps:$4 sm:$0xff]  }
  0xd4   : > { %857 = vmatpush1.bf16.msra.mxu1 %v3038_v21  ;;  %876 = vmatprep.mubr.bf16.mxu1 %v3813_v33  ;;  %v3098_v21 = vld [vmem:[%s3755_s29 + $0x108] ss:$16 sps:$4 sm:$0xff]  }
  0xd5   : > { %858 = vmatprep.subr.bf16.mxu1 %v3049_v22  ;;  %v3103_v22 = vld [vmem:[%s3755_s29 + $0x12c] ss:$16 sps:$4 sm:$0xff]  }
  0xd6   : > { %2114 = vmatpush1.bf16.msra.mxu0 %v3137_v46  ;;  %v3121_v46 = vld [vmem:[%s3755_s29 + $0x1ec] ss:$16 sps:$4 sm:$0xff]  }
  0xd7   : > { %2115 = vmatprep.subr.bf16.mxu0 %v3142_v48  ;;  %v3172_v48 = vld [vmem:[%s3899_s6 + $0x104] ss:$8 sps:$4 sm:$0xff]  }
  0xd8   : > { %859 = vmatpush1.bf16.msra.mxu1 %v3047_v23  ;;  %1364 = vmatmul.mubr.bf16.gmra.mrb[12].mxu0 %v3889_v20  ;;  %v3154_v23 = vld [vmem:[%s3899_s6 + $0xa4] ss:$8 sps:$4 sm:$0xff]  }
  0xd9   : > { %860 = vmatprep.subr.bf16.mxu1 %v3052_v24  ;;  %v3101_v24 = vld [vmem:[%s3755_s29 + $0x128] ss:$16 sps:$4 sm:$0xff]  }
  0xda   : > { %2116 = vmatpush1.bf16.msra.mxu0 %v3140_v50 }
  0xdb   : > { %2117 = vmatprep.subr.bf16.mxu0 %v3145_v6 }
  0xdc   : > { %861 = vmatpush1.bf16.msra.mxu1 %v3050_v28  ;;  %v3104_v28 = vld [vmem:[%s3755_s29 + $0x148] ss:$16 sps:$4 sm:$0xff]  }
  0xdd   : > { %862 = vmatprep.subr.bf16.mxu1 %v3055_v29  ;;  %v3109_v29 = vld [vmem:[%s3755_s29 + $0x16c] ss:$16 sps:$4 sm:$0xff]  }
  0xde   : > { %2118 = vmatpush1.bf16.msra.mxu0 %v3143_v8 }
  0xdf   : > { %2119 = vmatprep.subr.bf16.mxu0 %v3148_v12 }
  0xe0   : > { %863 = vmatpush1.bf16.msra.mxu1 %v3053_v32  ;;  %v3107_v32 = vld [vmem:[%s3755_s29 + $0x168] ss:$16 sps:$4 sm:$0xff]  }
  0xe1   : > { %864 = vmatprep.subr.bf16.mxu1 %v3058_v34  ;;  %v3112_v34 = vld [vmem:[%s3755_s29 + $0x18c] ss:$16 sps:$4 sm:$0xff]  }
  0xe2   : > { %2120 = vmatpush1.bf16.msra.mxu0 %v3146_v13 }
  0xe3   : > { %2121 = vmatprep.subr.bf16.mxu0 %v3151_v18 }
  0xe4   : > { %865 = vmatpush1.bf16.msra.mxu1 %v3056_v37  ;;  %v3110_v37 = vld [vmem:[%s3755_s29 + $0x188] ss:$16 sps:$4 sm:$0xff]  }
  0xe5   : > { %866 = vmatprep.subr.bf16.mxu1 %v3061_v39  ;;  %v3166_v39 = vld [vmem:[%s3899_s6 + $0xe4] ss:$8 sps:$4 sm:$0xff]  }
  0xe6   : > { %2122 = vmatpush1.bf16.msra.mxu0 %v3149_v19 }
  0xe7   : > { %2123 = vmatprep.subr.bf16.mxu0 %v3154_v23 }
  0xe8   : > { %867 = vmatpush1.bf16.msra.mxu1 %v3059_v41  ;;  %v3113_v41 = vld [vmem:[%s3755_s29 + $0x1a8] ss:$16 sps:$4 sm:$0xff]  }
  0xe9   : > { %868 = vmatprep.subr.bf16.mxu1 %v3064_v43  ;;  %v3169_v43 = vld [vmem:[%s3899_s6 + $0xf4] ss:$8 sps:$4 sm:$0xff]  }
  0xec   : > { %869 = vmatpush1.bf16.msra.mxu1 %v3062_v45  ;;  %v3116_v45 = vld [vmem:[%s3755_s29 + $0x1c8] ss:$16 sps:$4 sm:$0xff]  }
  0xed   : > { %870 = vmatprep.subr.bf16.mxu1 %v3067_v47  ;;  %v3119_v47 = vld [vmem:[%s3755_s29 + $0x1e8] ss:$16 sps:$4 sm:$0xff]  }
  0xf0   : > { %871 = vmatpush1.bf16.msra.mxu1 %v3065_v49 }
  0xf1   : > { %872 = vmatprep.subr.bf16.mxu1 %v3070_v51 }
  0xf4   : > { %873 = vmatpush1.bf16.msra.mxu1 %v3068_v52 }
  0xf5   : > { %874 = vmatprep.subr.bf16.mxu1 %v3073_v53 }
  0xf8   : > { %875 = vmatpush1.bf16.msra.mxu1 %v3071_v54 }
  0xf9   : > { %1374 = vmatprep.subr.bf16.mxu1 %v3076_v55 }
  0xfb   : > { %877 = vmatmul.mubr.bf16.vlgmr.msra.gmra.mrb[16].mxu1 %v3845_v61 }
  0xfc   : > { %1375 = vmatpush1.bf16.msra.mxu1 %v3074_v56  ;;  %886 = vmatprep.mubr.bf16.mxu1 %v3851_v1 }
  0xfd   : > { %1376 = vmatprep.subr.bf16.mxu1 %v3079_v57 }
 0x100   : > { %1377 = vmatpush1.bf16.msra.mxu1 %v3077_v58 }
 0x101   : > { %1378 = vmatprep.subr.bf16.mxu1 %v3082_v59 }
 0x103   : > { %887 = vmatmul.mubr.bf16.gmra.mrb[20].mxu1 %v3861_v7 }
 0x104   : > { %1379 = vmatpush1.bf16.msra.mxu1 %v3080_v60  ;;  %896 = vmatprep.mubr.bf16.mxu1 %v3866_v10 }
 0x105   : > { %1380 = vmatprep.subr.bf16.mxu1 %v3085_v62 }
 0x108   : > { %1381 = vmatpush1.bf16.msra.mxu1 %v3083_v63 }
 0x109   : > { %1382 = vmatprep.subr.bf16.mxu1 %v3088_v0 }
 0x10b   : > { %897 = vmatmul.mubr.bf16.gmra.mrb[24].mxu1 %v3875_v14 }
 0x10c   : > { %1383 = vmatpush1.bf16.msra.mxu1 %v3086_v2  ;;  %906 = vmatprep.mubr.bf16.mxu1 %v3880_v16 }
 0x10d   : > { %1384 = vmatprep.subr.bf16.mxu1 %v3091_v3 }
 0x110   : > { %1385 = vmatpush1.bf16.msra.mxu1 %v3089_v4 }
 0x111   : > { %1386 = vmatprep.subr.bf16.mxu1 %v3094_v5 }
 0x113   : > { %907 = vmatmul.mubr.bf16.gmra.mrb[28].mxu1 %v3889_v20 }
 0x114   : > { %1387 = vmatpush1.bf16.msra.mxu1 %v3092_v9  ;;  %1406 = vmatprep.mubr.bf16.mxu1 %v3813_v33  ;;  %v3152_v33 = vld [vmem:[%s3899_s6 + $0xa0] ss:$8 sps:$4 sm:$0xff]  }
 0x115   : > { %1388 = vmatprep.subr.bf16.mxu1 %v3097_v11  ;;  %2124 = vmatpush1.bf16.msra.mxu0 %v3152_v33 }
 0x116   : > { %2125 = vmatprep.subr.bf16.mxu0 %v3157_v26 }
 0x118   : > { %1389 = vmatpush1.bf16.msra.mxu1 %v3095_v15 }
 0x119   : > { %1390 = vmatprep.subr.bf16.mxu1 %v3100_v17  ;;  %2126 = vmatpush1.bf16.msra.mxu0 %v3155_v27 }
 0x11a   : > { %2127 = vmatprep.subr.bf16.mxu0 %v3160_v30 }
 0x11c   : > { %1391 = vmatpush1.bf16.msra.mxu1 %v3098_v21 }
 0x11d   : > { %1392 = vmatprep.subr.bf16.mxu1 %v3103_v22  ;;  %2128 = vmatpush1.bf16.msra.mxu0 %v3158_v31 }
 0x11e   : > { %2129 = vmatprep.subr.bf16.mxu0 %v3163_v35 }
 0x120   : > { %1393 = vmatpush1.bf16.msra.mxu1 %v3101_v24 }
 0x121   : > { %1394 = vmatprep.subr.bf16.mxu1 %v3106_v25  ;;  %2130 = vmatpush1.bf16.msra.mxu0 %v3161_v36 }
 0x122   : > { %2131 = vmatprep.subr.bf16.mxu0 %v3166_v39 }
 0x124   : > { %1395 = vmatpush1.bf16.msra.mxu1 %v3104_v28 }
 0x125   : > { %1396 = vmatprep.subr.bf16.mxu1 %v3109_v29  ;;  %2132 = vmatpush1.bf16.msra.mxu0 %v3164_v40 }
 0x126   : > { %2133 = vmatprep.subr.bf16.mxu0 %v3169_v43 }
 0x128   : > { %1397 = vmatpush1.bf16.msra.mxu1 %v3107_v32 }
 0x129   : > { %1398 = vmatprep.subr.bf16.mxu1 %v3112_v34  ;;  %2134 = vmatpush1.bf16.msra.mxu0 %v3167_v44 }
 0x12a   : > { %2176 = vmatprep.subr.bf16.mxu0 %v3172_v48 }
 0x12c   : > { %1399 = vmatpush1.bf16.msra.mxu1 %v3110_v37 }
 0x12d   : > { %1400 = vmatprep.subr.bf16.mxu1 %v3115_v38 }
 0x130   : > { %1401 = vmatpush1.bf16.msra.mxu1 %v3113_v41 }
 0x131   : > { %1402 = vmatprep.subr.bf16.mxu1 %v3118_v42 }
 0x134   : > { %1403 = vmatpush1.bf16.msra.mxu1 %v3116_v45 }
 0x135   : > { %1404 = vmatprep.subr.bf16.mxu1 %v3121_v46 }
 0x138   : > { %1405 = vmatpush1.bf16.msra.mxu1 %v3119_v47 }
 0x13b   : > { %1407 = vmatmul.mubr.bf16.vlgmr.msra.gmra.mrb[32].mxu1 %v3845_v61 }
 0x13c   : > { %1416 = vmatprep.mubr.bf16.mxu1 %v3851_v1 }
 0x143   : > { %1417 = vmatmul.mubr.bf16.gmra.mrb[36].mxu1 %v3861_v7 }
 0x144   : > { %1426 = vmatprep.mubr.bf16.mxu1 %v3866_v10 }
 0x14b   : > { %1427 = vmatmul.mubr.bf16.gmra.mrb[40].mxu1 %v3875_v14 }
 0x14c   : > { %1436 = vmatprep.mubr.bf16.mxu1 %v3880_v16 }
 0x153   : > { %1437 = vmatmul.mubr.bf16.gmra.mrb[44].mxu1 %v3889_v20 }
 0x18e   : > { %v3999_v49 = vpop.f32.mrb[0].mxu1 }
 0x18f   : > { %v2693_v50 = vmul.f32 -1.442695, %v3999_v49  ;;  %v4002_v51 = vpop.f32.mrb[1].mxu1 }
 0x190   : > { %v2694_v61 = vmul.f32 -1.442695, %v4002_v51  ;;  %v4005_v1 = vpop.f32.mrb[2].mxu1 }
 0x191   : > { %3218 = vpow2.f32 %v2693_v50  ;;  %v2697_v7 = vmul.f32 -1.442695, %v4005_v1  ;;  %v4008_v10 = vpop.f32.mrb[3].mxu1 }
 0x192   : > { %3220 = vpow2.f32 %v2694_v61  ;;  %v2698_v14 = vmul.f32 -1.442695, %v4008_v10 }
 0x193   : > { %3222 = vpow2.f32 %v2697_v7  ;;  %v4022_v57 = vpop.f32.mrb[0].mxu0 }
 0x194   : > { %3224 = vpow2.f32 %v2698_v14  ;;  %v4025_v59 = vpop.f32.mrb[1].mxu0 }
 0x195   : > { %v4027_v62 = vpop.f32.mrb[2].mxu0 }
 0x196   : > { %v4011_v16 = vpop.f32.mrb[4].mxu1  ;;  %v4029_v2 = vpop.f32.mrb[3].mxu0 }
 0x197   : > { %v2701_v20 = vmul.f32 -1.442695, %v4011_v16  ;;  %v4014_v52 = vpop.f32.mrb[5].mxu1 }
 0x198   : > { %v2702_v53 = vmul.f32 -1.442695, %v4014_v52  ;;  %v4017_v54 = vpop.f32.mrb[6].mxu1 }
 0x199   : > { %3226 = vpow2.f32 %v2701_v20  ;;  %v2705_v55 = vmul.f32 -1.442695, %v4017_v54  ;;  %v4020_v56 = vpop.f32.mrb[7].mxu1 }
 0x19a   : > { %3228 = vpow2.f32 %v2702_v53  ;;  %v2706_v58 = vmul.f32 -1.442695, %v4020_v56 }
 0x19b   : > { %v3219_v60 = vpop.eup %3218  ;;  %3230 = vpow2.f32 %v2705_v55  ;;  %v4042_v19 = vpop.f32.mrb[4].mxu0 }
 0x19c   : > { %v3221_v63 = vpop.eup %3220  ;;  %v1543_v0 = vadd.f32 1.0, %v3219_v60  ;;  %3232 = vpow2.f32 %v2706_v58  ;;  %v4045_v22 = vpop.f32.mrb[5].mxu0 }
 0x19d   : > { %v3223_v3 = vpop.eup %3222  ;;  %v1544_v4 = vadd.f32 1.0, %v3221_v63  ;;  %v4047_v33 = vpop.f32.mrb[6].mxu0 }
 0x19e   : > { %v3225_v5 = vpop.eup %3224  ;;  %3234 = vrcp.f32 %v1543_v0  ;;  %v1547_v6 = vadd.f32 1.0, %v3223_v3  ;;  %v4031_v8 = vpop.f32.mrb[8].mxu1 }
 0x19f   : > { %3236 = vrcp.f32 %v1544_v4  ;;  %v1548_v9 = vadd.f32 1.0, %v3225_v5  ;;  %v2709_v11 = vmul.f32 -1.442695, %v4031_v8  ;;  %v4034_v12 = vpop.f32.mrb[9].mxu1  ;;  %v4049_v26 = vpop.f32.mrb[7].mxu0 }
 0x1a0   : > { %3238 = vrcp.f32 %v1547_v6  ;;  %v2710_v13 = vmul.f32 -1.442695, %v4034_v12  ;;  %v4037_v15 = vpop.f32.mrb[10].mxu1  ;;  %v3170_v5 = vld [vmem:[%s3899_s6 + $0x100] ss:$8 sps:$4 sm:$0xff]  }
 0x1a1   : > { %3240 = vrcp.f32 %v1548_v9  ;;  %v2713_v17 = vmul.f32 -1.442695, %v4037_v15  ;;  %v4040_v18 = vpop.f32.mrb[11].mxu1 }
 0x1a2   : > { %3242 = vpow2.f32 %v2709_v11  ;;  %v2714_v21 = vmul.f32 -1.442695, %v4040_v18 }
 0x1a3   : > { %v3227_v23 = vpop.eup %3226  ;;  %3244 = vpow2.f32 %v2710_v13  ;;  %v4063_v43 = vpop.f32.mrb[8].mxu0 }
 0x1a4   : > { %v3229_v24 = vpop.eup %3228  ;;  %v1551_v25 = vadd.f32 1.0, %v3227_v23  ;;  %3246 = vpow2.f32 %v2713_v17  ;;  %v4067_v47 = vpop.f32.mrb[9].mxu0 }
 0x1a5   : > { %v3231_v27 = vpop.eup %3230  ;;  %v1552_v28 = vadd.f32 1.0, %v3229_v24  ;;  %3248 = vpow2.f32 %v2714_v21  ;;  %v4071_v61 = vpop.f32.mrb[10].mxu0 }
 0x1a6   : > { %v3233_v29 = vpop.eup %3232  ;;  %3250 = vrcp.f32 %v1551_v25  ;;  %v1555_v30 = vadd.f32 1.0, %v3231_v27  ;;  %v4051_v31 = vpop.f32.mrb[12].mxu1 }
 0x1a7   : > { %3252 = vrcp.f32 %v1552_v28  ;;  %v1556_v32 = vadd.f32 1.0, %v3233_v29  ;;  %v2717_v34 = vmul.f32 -1.442695, %v4051_v31  ;;  %v4054_v35 = vpop.f32.mrb[13].mxu1 }
 0x1a8   : > { %v3235_v36 = vpop.eup %3234  ;;  %3254 = vrcp.f32 %v1555_v30  ;;  %v2718_v37 = vmul.f32 -1.442695, %v4054_v35  ;;  %v4057_v38 = vpop.f32.mrb[14].mxu1 }
 0x1a9   : > { %v3237_v39 = vpop.eup %3236  ;;  %v1639_v40 = vmul.f32 %v3235_v36, %v3999_v49  ;;  %3256 = vrcp.f32 %v1556_v32  ;;  %v2721_v41 = vmul.f32 -1.442695, %v4057_v38  ;;  %v4061_v42 = vpop.f32.mrb[15].mxu1 }
 0x1aa   : > { %v3239_v44 = vpop.eup %3238  ;;  %v1640_v45 = vmul.f32 %v3237_v39, %v4002_v51  ;;  %3258 = vpow2.f32 %v2717_v34  ;;  %v2722_v46 = vmul.f32 -1.442695, %v4061_v42  ;;  %v4075_v51 = vpop.f32.mrb[11].mxu0 }
 0x1ab   : > { %v3241_v48 = vpop.eup %3240  ;;  %v1643_v50 = vmul.f32 %v3239_v44, %v4005_v1  ;;  %3260 = vpow2.f32 %v2718_v37  ;;  %v1671_v49 = vmul.f32 %v1639_v40, %v4022_v57  ;;  %v4081_v11 = vpop.f32.mrb[12].mxu0  ;;  %v3176_v44 = vld [vmem:[%s3899_s6 + $0x120] ss:$8 sps:$4 sm:$0xff]  }
 0x1ac   : > { %v3243_v7 = vpop.eup %3242  ;;  %v1644_v14 = vmul.f32 %v3241_v48, %v4008_v10  ;;  %3262 = vpow2.f32 %v2721_v41  ;;  %v1672_v20 = vmul.f32 %v1640_v45, %v4025_v59  ;;  %v4085_v17 = vpop.f32.mrb[13].mxu0 }
 0x1ad   : > { %v3245_v53 = vpop.eup %3244  ;;  %v1559_v55 = vadd.f32 1.0, %v3243_v7  ;;  %3264 = vpow2.f32 %v2722_v46  ;;  %v1675_v58 = vmul.f32 %v1643_v50, %v4027_v62  ;;  %v3175_v62 = vld [vmem:[%s3899_s6 + $0x114] ss:$8 sps:$4 sm:$0xff]  }
 0x1ae   : > { %v3247_v1 = vpop.eup %3246  ;;  %v1560_v60 = vadd.f32 1.0, %v3245_v53  ;;  %v1676_v57 = vmul.f32 %v1644_v14, %v4029_v2 }
 0x1af   : > { %v3249_v63 = vpop.eup %3248  ;;  %3266 = vrcp.f32 %v1559_v55  ;;  %v1563_v0 = vadd.f32 1.0, %v3247_v1  ;;  %v1703_v10 = vpack.c.bf16 %v1675_v58, %v1671_v49 }
 0x1b0   : > { %v3251_v3 = vpop.eup %3250  ;;  %3268 = vrcp.f32 %v1560_v60  ;;  %v1564_v59 = vadd.f32 1.0, %v3249_v63  ;;  %v1704_v4 = vpack.c.bf16 %v1676_v57, %v1672_v20  ;;  %v3179_v20 = vld [vmem:[%s3899_s6 + $0x130] ss:$8 sps:$4 sm:$0xff]  }
 0x1b1   : > { %v3253_v6 = vpop.eup %3252  ;;  %v1647_v9 = vmul.f32 %v3251_v3, %v4011_v16  ;;  %3270 = vrcp.f32 %v1563_v0  ;;  %v4089_v16 = vpop.f32.mrb[14].mxu0 }
 0x1b2   : > { %v3255_v13 = vpop.eup %3254  ;;  %v1648_v2 = vmul.f32 %v3253_v6, %v4014_v52  ;;  %3272 = vrcp.f32 %v1564_v59  ;;  %2135 = vmatprep.mubr.bf16.mxu0 %v1704_v4  ;;  %v4093_v29 = vpop.f32.mrb[15].mxu0  ;;  %v3173_v52 = vld [vmem:[%s3899_s6 + $0x110] ss:$8 sps:$4 sm:$0xff]  }
 0x1b3   : > { %v3257_v21 = vpop.eup %3256  ;;  %v1651_v23 = vmul.f32 %v3255_v13, %v4017_v54  ;;  %2136 = vmatmul.mubr.bf16.vlgmr.msra.gmra.mrb[16].mxu0 %v1703_v10  ;;  %v1679_v24 = vmul.f32 %v1647_v9, %v4042_v19  ;;  %v3178_v54 = vld [vmem:[%s3899_s6 + $0x124] ss:$8 sps:$4 sm:$0xff]   ;;  %v3188_v9 = vld [vmem:[%s3899_s6 + $0x160] ss:$8 sps:$4 sm:$0xff]  }
 0x1b4   : > { %v3259_v25 = vpop.eup %3258  ;;  %v1652_v27 = vmul.f32 %v3257_v21, %v4020_v56  ;;  %v1680_v28 = vmul.f32 %v1648_v2, %v4045_v22  ;;  %2177 = vmatpush1.bf16.msra.mxu0 %v3170_v5  ;;  %v3196_v13 = vld [vmem:[%s3899_s6 + $0x184] ss:$8 sps:$4 sm:$0xff]  }
 0x1b5   : > { %v3261_v30 = vpop.eup %3260  ;;  %v1567_v32 = vadd.f32 1.0, %v3259_v25  ;;  %v1683_v34 = vmul.f32 %v1651_v23, %v4047_v33  ;;  %2178 = vmatprep.subr.bf16.mxu0 %v3175_v62  ;;  %v3181_v33 = vld [vmem:[%s3899_s6 + $0x134] ss:$8 sps:$4 sm:$0xff]   ;;  %v3194_v23 = vld [vmem:[%s3899_s6 + $0x180] ss:$8 sps:$4 sm:$0xff]  }
 0x1b6   : > { %v3263_v19 = vpop.eup %3262  ;;  %v1568_v36 = vadd.f32 1.0, %v3261_v30  ;;  %v1684_v37 = vmul.f32 %v1652_v27, %v4049_v26  ;;  %v3202_v27 = vld [vmem:[%s3899_s6 + $0x1a4] ss:$8 sps:$4 sm:$0xff]   ;;  %v3200_v30 = vld [vmem:[%s3899_s6 + $0x1a0] ss:$8 sps:$4 sm:$0xff]  }
 0x1b7   : > { %v3265_v39 = vpop.eup %3264  ;;  %3274 = vrcp.f32 %v1567_v32  ;;  %v1571_v56 = vadd.f32 1.0, %v3263_v19  ;;  %v1707_v22 = vpack.c.bf16 %v1683_v34, %v1679_v24  ;;  %v3199_v24 = vld [vmem:[%s3899_s6 + $0x194] ss:$8 sps:$4 sm:$0xff]   ;;  %v3203_v34 = vld [vmem:[%s3899_s6 + $0x1b0] ss:$8 sps:$4 sm:$0xff]  }
 0x1b8   : > { %3276 = vrcp.f32 %v1568_v36  ;;  %v1572_v40 = vadd.f32 1.0, %v3265_v39  ;;  %v1708_v41 = vpack.c.bf16 %v1684_v37, %v1680_v28  ;;  %2179 = vmatpush1.bf16.msra.mxu0 %v3173_v52  ;;  %v3205_v32 = vld [vmem:[%s3899_s6 + $0x1b4] ss:$8 sps:$4 sm:$0xff]   ;;  %v3208_v19 = vld [vmem:[%s3899_s6 + $0x1c4] ss:$8 sps:$4 sm:$0xff]  }
 0x1b9   : > { %v3267_v45 = vpop.eup %3266  ;;  %3278 = vrcp.f32 %v1571_v56  ;;  %2180 = vmatprep.subr.bf16.mxu0 %v3178_v54  ;;  %v3206_v56 = vld [vmem:[%s3899_s6 + $0x1c0] ss:$8 sps:$4 sm:$0xff]  }
 0x1ba   : > { %v3269_v46 = vpop.eup %3268  ;;  %v1655_v48 = vmul.f32 %v3267_v45, %v4031_v8  ;;  %3280 = vrcp.f32 %v1572_v40  ;;  %2145 = vmatprep.mubr.bf16.mxu0 %v1708_v41  ;;  %v3184_v8 = vld [vmem:[%s3899_s6 + $0x144] ss:$8 sps:$4 sm:$0xff]   ;;  %v3209_v40 = vld [vmem:[%s3899_s6 + $0x1d0] ss:$8 sps:$4 sm:$0xff]  }
 0x1bb   : > { %v3271_v26 = vpop.eup %3270  ;;  %v1656_v50 = vmul.f32 %v3269_v46, %v4034_v12  ;;  %2146 = vmatmul.mubr.bf16.gmra.mrb[20].mxu0 %v1707_v22  ;;  %v3211_v22 = vld [vmem:[%s3899_s6 + $0x1d4] ss:$8 sps:$4 sm:$0xff]  }
 0x1bc   : > { %v3273_v49 = vpop.eup %3272  ;;  %v1659_v7 = vmul.f32 %v3271_v26, %v4037_v15  ;;  %v1687_v14 = vmul.f32 %v1655_v48, %v4063_v43  ;;  %2181 = vmatpush1.bf16.msra.mxu0 %v3176_v44  ;;  %v3182_v15 = vld [vmem:[%s3899_s6 + $0x140] ss:$8 sps:$4 sm:$0xff]   ;;  %v3214_v44 = vld [vmem:[%s3899_s6 + $0x1e4] ss:$8 sps:$4 sm:$0xff]  }
 0x1bd   : > { %v1660_v53 = vmul.f32 %v3273_v49, %v4040_v18  ;;  %v1688_v55 = vmul.f32 %v1656_v50, %v4067_v47  ;;  %2182 = vmatprep.subr.bf16.mxu0 %v3181_v33  ;;  %v3187_v18 = vld [vmem:[%s3899_s6 + $0x154] ss:$8 sps:$4 sm:$0xff]   ;;  %v3212_v49 = vld [vmem:[%s3899_s6 + $0x1e0] ss:$8 sps:$4 sm:$0xff]  }
 0x1be   : > { %v1691_v58 = vmul.f32 %v1659_v7, %v4071_v61  ;;  %v3217_v7 = vld [vmem:[%s3899_s6 + $0x1f4] ss:$8 sps:$4 sm:$0xff]  }
 0x1bf   : > { %v1692_v12 = vmul.f32 %v1660_v53, %v4075_v51 }
 0x1c0   : > { %v1711_v1 = vpack.c.bf16 %v1691_v58, %v1687_v14  ;;  %2183 = vmatpush1.bf16.msra.mxu0 %v3179_v20  ;;  %v3215_v14 = vld [vmem:[%s3899_s6 + $0x1f0] ss:$8 sps:$4 sm:$0xff]  }
 0x1c1   : > { %v3275_v60 = vpop.eup %3274  ;;  %v1712_v57 = vpack.c.bf16 %v1692_v12, %v1688_v55  ;;  %2184 = vmatprep.subr.bf16.mxu0 %v3184_v8 }
 0x1c2   : > { %v3277_v43 = vpop.eup %3276  ;;  %v1663_v63 = vmul.f32 %v3275_v60, %v4051_v31  ;;  %v3185_v31 = vld [vmem:[%s3899_s6 + $0x150] ss:$8 sps:$4 sm:$0xff]  }
 0x1c3   : > { %v3279_v0 = vpop.eup %3278  ;;  %v1664_v47 = vmul.f32 %v3277_v43, %v4054_v35  ;;  %2155 = vmatprep.mubr.bf16.mxu0 %v1712_v57  ;;  %v3190_v35 = vld [vmem:[%s3899_s6 + $0x164] ss:$8 sps:$4 sm:$0xff]  }
 0x1c4   : > { %v3281_v61 = vpop.eup %3280  ;;  %v1667_v51 = vmul.f32 %v3279_v0, %v4057_v38  ;;  %v1695_v10 = vmul.f32 %v1663_v63, %v4081_v11  ;;  %2156 = vmatmul.mubr.bf16.gmra.mrb[24].mxu0 %v1711_v1  ;;  %v3191_v11 = vld [vmem:[%s3899_s6 + $0x170] ss:$8 sps:$4 sm:$0xff]  }
 0x1c5   : > { %v1668_v3 = vmul.f32 %v3281_v61, %v4061_v42  ;;  %v1696_v59 = vmul.f32 %v1664_v47, %v4085_v17  ;;  %2185 = vmatpush1.bf16.msra.mxu0 %v3182_v15  ;;  %v3193_v42 = vld [vmem:[%s3899_s6 + $0x174] ss:$8 sps:$4 sm:$0xff]  }
 0x1c6   : > { %v1699_v4 = vmul.f32 %v1667_v51, %v4089_v16  ;;  %2186 = vmatprep.subr.bf16.mxu0 %v3187_v18  ;;  %v3197_v16 = vld [vmem:[%s3899_s6 + $0x190] ss:$8 sps:$4 sm:$0xff]  }
 0x1c7   : > { %v1700_v5 = vmul.f32 %v1668_v3, %v4093_v29 }
 0x1c8   : > { %v1715_v6 = vpack.c.bf16 %v1699_v4, %v1695_v10 }
 0x1c9   : > { %v1716_v38 = vpack.c.bf16 %v1700_v5, %v1696_v59  ;;  %2187 = vmatpush1.bf16.msra.mxu0 %v3185_v31 }
 0x1ca   : > { %2188 = vmatprep.subr.bf16.mxu0 %v3190_v35 }
 0x1cb   : > { %2165 = vmatprep.mubr.bf16.mxu0 %v1716_v38 }
 0x1cc   : > { %2166 = vmatmul.mubr.bf16.gmra.mrb[28].mxu0 %v1715_v6 }
 0x1cd   : > { %2189 = vmatpush1.bf16.msra.mxu0 %v3188_v9 }
 0x1ce   : > { %v4126_v62 = vpop.f32.mrb[16].mxu1  ;;  %2190 = vmatprep.subr.bf16.mxu0 %v3193_v42 }
 0x1cf   : > { %v4129_v2 = vpop.f32.mrb[17].mxu1  ;;  %v2695_v45 = vmul.f32 -1.442695, %v4126_v62 }
 0x1d0   : > { %v4131_v17 = vpop.f32.mrb[18].mxu1  ;;  %v2696_v46 = vmul.f32 -1.442695, %v4129_v2 }
 0x1d1   : > { %v4133_v21 = vpop.f32.mrb[19].mxu1  ;;  %2191 = vmatpush1.bf16.msra.mxu0 %v3191_v11  ;;  %v2699_v26 = vmul.f32 -1.442695, %v4131_v17  ;;  %3282 = vpow2.f32 %v2695_v45 }
 0x1d2   : > { %2192 = vmatprep.subr.bf16.mxu0 %v3196_v13  ;;  %3284 = vpow2.f32 %v2696_v46  ;;  %v2700_v20 = vmul.f32 -1.442695, %v4133_v21 }
 0x1d3   : > { %3286 = vpow2.f32 %v2699_v26 }
 0x1d4   : > { %3288 = vpow2.f32 %v2700_v20 }
 0x1d5   : > { %2193 = vmatpush1.bf16.msra.mxu0 %v3194_v23 }
 0x1d6   : > { %v4138_v25 = vpop.f32.mrb[20].mxu1  ;;  %2194 = vmatprep.subr.bf16.mxu0 %v3199_v24 }
 0x1d7   : > { %v4141_v28 = vpop.f32.mrb[21].mxu1  ;;  %v2703_v53 = vmul.f32 -1.442695, %v4138_v25 }
 0x1d8   : > { %v4143_v29 = vpop.f32.mrb[22].mxu1  ;;  %v2704_v55 = vmul.f32 -1.442695, %v4141_v28 }
 0x1d9   : > { %v4145_v52 = vpop.f32.mrb[23].mxu1  ;;  %2195 = vmatpush1.bf16.msra.mxu0 %v3197_v16  ;;  %v2707_v8 = vmul.f32 -1.442695, %v4143_v29  ;;  %3290 = vpow2.f32 %v2703_v53 }
 0x1da   : > { %2196 = vmatprep.subr.bf16.mxu0 %v3202_v27  ;;  %3292 = vpow2.f32 %v2704_v55  ;;  %v2708_v1 = vmul.f32 -1.442695, %v4145_v52 }
 0x1db   : > { %v3283_v58 = vpop.eup %3282  ;;  %3294 = vpow2.f32 %v2707_v8 }
 0x1dc   : > { %v3285_v12 = vpop.eup %3284  ;;  %v1545_v57 = vadd.f32 1.0, %v3283_v58  ;;  %3296 = vpow2.f32 %v2708_v1 }
 0x1dd   : > { %2197 = vmatpush1.bf16.msra.mxu0 %v3200_v30  ;;  %v3287_v60 = vpop.eup %3286  ;;  %v1546_v15 = vadd.f32 1.0, %v3285_v12 }
 0x1de   : > { %v4150_v54 = vpop.f32.mrb[24].mxu1  ;;  %2198 = vmatprep.subr.bf16.mxu0 %v3205_v32  ;;  %v1549_v43 = vadd.f32 1.0, %v3287_v60  ;;  %v3289_v18 = vpop.eup %3288  ;;  %3298 = vrcp.f32 %v1545_v57 }
 0x1df   : > { %v4153_v36 = vpop.f32.mrb[25].mxu1  ;;  %v2711_v63 = vmul.f32 -1.442695, %v4150_v54  ;;  %3300 = vrcp.f32 %v1546_v15  ;;  %v1550_v59 = vadd.f32 1.0, %v3289_v18 }
 0x1e0   : > { %v4155_v37 = vpop.f32.mrb[26].mxu1  ;;  %v2712_v0 = vmul.f32 -1.442695, %v4153_v36  ;;  %3302 = vrcp.f32 %v1549_v43 }
 0x1e1   : > { %v4157_v39 = vpop.f32.mrb[27].mxu1  ;;  %2199 = vmatpush1.bf16.msra.mxu0 %v3203_v34  ;;  %v2715_v61 = vmul.f32 -1.442695, %v4155_v37  ;;  %3304 = vpow2.f32 %v2711_v63 }
 0x1e2   : > { %2200 = vmatprep.subr.bf16.mxu0 %v3208_v19  ;;  %v2716_v10 = vmul.f32 -1.442695, %v4157_v39  ;;  %3306 = vpow2.f32 %v2712_v0 }
 0x1e3   : > { %v3291_v47 = vpop.eup %3290  ;;  %3308 = vpow2.f32 %v2715_v61 }
 0x1e4   : > { %v3293_v51 = vpop.eup %3292  ;;  %v1553_v31 = vadd.f32 1.0, %v3291_v47  ;;  %3310 = vpow2.f32 %v2716_v10 }
 0x1e5   : > { %2201 = vmatpush1.bf16.msra.mxu0 %v3206_v56  ;;  %v3295_v3 = vpop.eup %3294  ;;  %v1554_v4 = vadd.f32 1.0, %v3293_v51  ;;  %3312 = vrcp.f32 %v1550_v59 }
 0x1e6   : > { %v4162_v41 = vpop.f32.mrb[28].mxu1  ;;  %2202 = vmatprep.subr.bf16.mxu0 %v3211_v22  ;;  %v1557_v35 = vadd.f32 1.0, %v3295_v3  ;;  %v3297_v6 = vpop.eup %3296  ;;  %3314 = vrcp.f32 %v1553_v31 }
 0x1e7   : > { %v4166_v33 = vpop.f32.mrb[29].mxu1  ;;  %v2719_v5 = vmul.f32 -1.442695, %v4162_v41  ;;  %3316 = vrcp.f32 %v1554_v4  ;;  %v1558_v23 = vadd.f32 1.0, %v3297_v6 }
 0x1e8   : > { %v4169_v48 = vpop.f32.mrb[30].mxu1  ;;  %v2720_v38 = vmul.f32 -1.442695, %v4166_v33  ;;  %v3299_v42 = vpop.eup %3298  ;;  %3318 = vrcp.f32 %v1557_v35 }
 0x1e9   : > { %v4172_v50 = vpop.f32.mrb[31].mxu1  ;;  %2203 = vmatpush1.bf16.msra.mxu0 %v3209_v40  ;;  %v2723_v9 = vmul.f32 -1.442695, %v4169_v48  ;;  %v3301_v13 = vpop.eup %3300  ;;  %3320 = vpow2.f32 %v2719_v5  ;;  %v1641_v56 = vmul.f32 %v3299_v42, %v4126_v62 }
 0x1ea   : > { %2204 = vmatprep.subr.bf16.mxu0 %v3214_v44  ;;  %v2724_v11 = vmul.f32 -1.442695, %v4172_v50  ;;  %v3303_v24 = vpop.eup %3302  ;;  %3322 = vpow2.f32 %v2720_v38  ;;  %v1642_v44 = vmul.f32 %v3301_v13, %v4129_v2 }
 0x1eb   : > { %v3305_v16 = vpop.eup %3304  ;;  %3324 = vpow2.f32 %v2723_v9 }
 0x1ec   : > { %v3307_v27 = vpop.eup %3306  ;;  %3326 = vpow2.f32 %v2724_v11  ;;  %v1561_v34 = vadd.f32 1.0, %v3305_v16 }
 0x1ed   : > { %2205 = vmatpush1.bf16.msra.mxu0 %v3212_v49  ;;  %v3309_v30 = vpop.eup %3308  ;;  %3328 = vrcp.f32 %v1558_v23  ;;  %v1562_v22 = vadd.f32 1.0, %v3307_v27  ;;  %v1645_v49 = vmul.f32 %v3303_v24, %v4131_v17 }
 0x1ee   : > { %2206 = vmatprep.subr.bf16.mxu0 %v3217_v7  ;;  %v3311_v32 = vpop.eup %3310  ;;  %v1565_v45 = vadd.f32 1.0, %v3309_v30  ;;  %3330 = vrcp.f32 %v1561_v34 }
 0x1ef   : > { %v3313_v19 = vpop.eup %3312  ;;  %v1566_v7 = vadd.f32 1.0, %v3311_v32  ;;  %3332 = vrcp.f32 %v1562_v22 }
 0x1f0   : > { %v3315_v40 = vpop.eup %3314  ;;  %v1646_v55 = vmul.f32 %v3313_v19, %v4133_v21  ;;  %3334 = vrcp.f32 %v1565_v45 }
 0x1f1   : > { %2207 = vmatpush1.bf16.msra.mxu0 %v3215_v14  ;;  %v3317_v26 = vpop.eup %3316  ;;  %3336 = vrcp.f32 %v1566_v7  ;;  %v1649_v0 = vmul.f32 %v3315_v40, %v4138_v25 }
 0x1f2   : > { %v3319_v53 = vpop.eup %3318  ;;  %v1650_v47 = vmul.f32 %v3317_v26, %v4141_v28 }
 0x1f3   : > { %v3321_v12 = vpop.eup %3320  ;;  %v1653_v10 = vmul.f32 %v3319_v53, %v4143_v29 }
 0x1f4   : > { %v3323_v60 = vpop.eup %3322  ;;  %v1569_v43 = vadd.f32 1.0, %v3321_v12 }
 0x1f5   : > { %v3325_v57 = vpop.eup %3324  ;;  %v1570_v21 = vadd.f32 1.0, %v3323_v60 }
 0x1f6   : > { %v3327_v17 = vpop.eup %3326  ;;  %v1573_v61 = vadd.f32 1.0, %v3325_v57  ;;  %3338 = vrcp.f32 %v1569_v43 }
 0x1f7   : > { %v3329_v18 = vpop.eup %3328  ;;  %v1574_v3 = vadd.f32 1.0, %v3327_v17  ;;  %3340 = vrcp.f32 %v1570_v21 }
 0x1f8   : > { %v1654_v4 = vmul.f32 %v3329_v18, %v4145_v52  ;;  %v3331_v38 = vpop.eup %3330  ;;  %3342 = vrcp.f32 %v1573_v61 }
 0x1f9   : > { %v3333_v9 = vpop.eup %3332  ;;  %3344 = vrcp.f32 %v1574_v3  ;;  %v1657_v23 = vmul.f32 %v3331_v38, %v4150_v54 }
 0x1fa   : > { %v3335_v11 = vpop.eup %3334  ;;  %v1658_v24 = vmul.f32 %v3333_v9, %v4153_v36 }
 0x1fb   : > { %v3337_v13 = vpop.eup %3336  ;;  %v1661_v16 = vmul.f32 %v3335_v11, %v4155_v37 }
 0x1fc   : > { %v1662_v32 = vmul.f32 %v3337_v13, %v4157_v39 }
 0x200   : > { %v3339_v40 = vpop.eup %3338 }
 0x201   : > { %v3341_v45 = vpop.eup %3340 }
 0x202   : > { %v3343_v54 = vpop.eup %3342  ;;  %v1666_v37 = vmul.f32 %v3341_v45, %v4166_v33 }
 0x203   : > { %v3345_v36 = vpop.eup %3344 }
 0x204   : > { %v1670_v53 = vmul.f32 %v3345_v36, %v4172_v50 }
 0x20e   : > { %v1408_v46 = vpop.f32.mrb[32].mxu1 }
 0x20f   : > { %v1673_v14 = vmul.f32 %v1641_v56, %v1408_v46  ;;  %v1410_v20 = vpop.f32.mrb[33].mxu1 }
 0x210   : > { %v1674_v8 = vmul.f32 %v1642_v44, %v1410_v20  ;;  %v1412_v58 = vpop.f32.mrb[34].mxu1 }
 0x211   : > { %v1677_v62 = vmul.f32 %v1645_v49, %v1412_v58  ;;  %v1414_v1 = vpop.f32.mrb[35].mxu1  ;;  %v1665_v49 = vmul.f32 %v3339_v40, %v4162_v41 }
 0x212   : > { %v1678_v2 = vmul.f32 %v1646_v55, %v1414_v1 }
 0x213   : > { %v1705_v15 = vpack.c.bf16 %v1677_v62, %v1673_v14  ;;  %v1669_v14 = vmul.f32 %v3343_v54, %v4169_v48 }
 0x214   : > { %v1706_v63 = vpack.c.bf16 %v1678_v2, %v1674_v8 }
 0x216   : > { %v1418_v51 = vpop.f32.mrb[36].mxu1  ;;  %2208 = vmatprep.mubr.bf16.mxu0 %v1706_v63 }
 0x217   : > { %v1681_v59 = vmul.f32 %v1649_v0, %v1418_v51  ;;  %v1420_v31 = vpop.f32.mrb[37].mxu1  ;;  %2209 = vmatmul.mubr.bf16.vlgmr.msra.gmra.mrb[16].mxu0 %v1705_v15 }
 0x218   : > { %v1682_v35 = vmul.f32 %v1650_v47, %v1420_v31  ;;  %v1422_v5 = vpop.f32.mrb[38].mxu1 }
 0x219   : > { %v1685_v6 = vmul.f32 %v1653_v10, %v1422_v5  ;;  %v1424_v25 = vpop.f32.mrb[39].mxu1 }
 0x21a   : > { %v1686_v28 = vmul.f32 %v1654_v4, %v1424_v25 }
 0x21b   : > { %v1709_v42 = vpack.c.bf16 %v1685_v6, %v1681_v59 }
 0x21c   : > { %v1710_v29 = vpack.c.bf16 %v1686_v28, %v1682_v35 }
 0x21e   : > { %v1428_v52 = vpop.f32.mrb[40].mxu1  ;;  %2218 = vmatprep.mubr.bf16.mxu0 %v1710_v29 }
 0x21f   : > { %v1689_v27 = vmul.f32 %v1657_v23, %v1428_v52  ;;  %v1430_v30 = vpop.f32.mrb[41].mxu1  ;;  %2219 = vmatmul.mubr.bf16.gmra.mrb[20].mxu0 %v1709_v42 }
 0x220   : > { %v1690_v34 = vmul.f32 %v1658_v24, %v1430_v30  ;;  %v1432_v19 = vpop.f32.mrb[42].mxu1 }
 0x221   : > { %v1693_v56 = vmul.f32 %v1661_v16, %v1432_v19  ;;  %v1434_v22 = vpop.f32.mrb[43].mxu1 }
 0x222   : > { %v1694_v44 = vmul.f32 %v1662_v32, %v1434_v22 }
 0x223   : > { %v1713_v46 = vpack.c.bf16 %v1693_v56, %v1689_v27 }
 0x224   : > { %v1714_v26 = vpack.c.bf16 %v1694_v44, %v1690_v34 }
 0x226   : > { %v1438_v7 = vpop.f32.mrb[44].mxu1  ;;  %2228 = vmatprep.mubr.bf16.mxu0 %v1714_v26 }
 0x227   : > { %v1697_v39 = vmul.f32 %v1665_v49, %v1438_v7  ;;  %v1440_v20 = vpop.f32.mrb[45].mxu1  ;;  %2229 = vmatmul.mubr.bf16.gmra.mrb[24].mxu0 %v1713_v46 }
 0x228   : > { %v1698_v55 = vmul.f32 %v1666_v37, %v1440_v20  ;;  %v1442_v8 = vpop.f32.mrb[46].mxu1 }
 0x229   : > { %v1701_v58 = vmul.f32 %v1669_v14, %v1442_v8  ;;  %v1444_v12 = vpop.f32.mrb[47].mxu1 }
 0x22a   : > { %v1702_v62 = vmul.f32 %v1670_v53, %v1444_v12 }
 0x22b   : > { %v1717_v1 = vpack.c.bf16 %v1701_v58, %v1697_v39 }
 0x22c   : > { %v1718_v60 = vpack.c.bf16 %v1702_v62, %v1698_v55 }
 0x22e   : > { %2238 = vmatprep.mubr.bf16.mxu0 %v1718_v60 }
 0x22f   : > { %2239 = vmatmul.mubr.bf16.gmra.mrb[28].mxu0 %v1717_v1 }
 0x2ea   : > { %v2210_v41 = vpop.f32.mrb[16].mxu0 }
 0x2eb   : > { %v2212_v33 = vpop.f32.mrb[17].mxu0  ;;  %2253 = vst [vmem:[#allocation2] sm:$0xff] (!%p2789_p4), %v2210_v41 }
 0x2ec   : > { %v2214_v2 = vpop.f32.mrb[18].mxu0  ;;  %2254 = vst [vmem:[#allocation2 + $0x8] sm:$0xff] (!%p2789_p4), %v2212_v33 }
 0x2ed   : > { %v2216_v57 = vpop.f32.mrb[19].mxu0  ;;  %2255 = vst [vmem:[#allocation2 + $0x10] sm:$0xff] (!%p2789_p4), %v2214_v2 }
 0x2ee   : > { %2256 = vst [vmem:[#allocation2 + $0x18] sm:$0xff] (!%p2789_p4), %v2216_v57 }
 0x2f2   : > { %v2220_v15 = vpop.f32.mrb[20].mxu0 }
 0x2f3   : > { %v2222_v48 = vpop.f32.mrb[21].mxu0  ;;  %2257 = vst [vmem:[#allocation2 + $0x20] sm:$0xff] (!%p2789_p4), %v2220_v15 }
 0x2f4   : > { %v2224_v17 = vpop.f32.mrb[22].mxu0  ;;  %2258 = vst [vmem:[#allocation2 + $0x28] sm:$0xff] (!%p2789_p4), %v2222_v48 }
 0x2f5   : > { %v2226_v43 = vpop.f32.mrb[23].mxu0  ;;  %2259 = vst [vmem:[#allocation2 + $0x30] sm:$0xff] (!%p2789_p4), %v2224_v17 }
 0x2f6   : > { %2260 = vst [vmem:[#allocation2 + $0x38] sm:$0xff] (!%p2789_p4), %v2226_v43 }
 0x2fa   : > { %v2230_v63 = vpop.f32.mrb[24].mxu0 }
 0x2fb   : > { %v2232_v18 = vpop.f32.mrb[25].mxu0  ;;  %2261 = vst [vmem:[#allocation2 + $0x40] sm:$0xff] (!%p2789_p4), %v2230_v63 }
 0x2fc   : > { %v2234_v50 = vpop.f32.mrb[26].mxu0  ;;  %2262 = vst [vmem:[#allocation2 + $0x48] sm:$0xff] (!%p2789_p4), %v2232_v18 }
 0x2fd   : > { %v2236_v0 = vpop.f32.mrb[27].mxu0  ;;  %2263 = vst [vmem:[#allocation2 + $0x50] sm:$0xff] (!%p2789_p4), %v2234_v50 }
 0x2fe   : > { %2264 = vst [vmem:[#allocation2 + $0x58] sm:$0xff] (!%p2789_p4), %v2236_v0 }
 0x2ff   : > { %2252 = sbr.rel (%p2789_p4) target bundleno = 775 (0x307), region = 52 }
 0x302   : > { %v2240_v21 = vpop.f32.mrb[28].mxu0 }
 0x303   : > { %v2242_v47 = vpop.f32.mrb[29].mxu0  ;;  %2265 = vst [vmem:[#allocation2 + $0x60] sm:$0xff] (!%p2789_p4), %v2240_v21 }
 0x304   : > { %v2244_v61 = vpop.f32.mrb[30].mxu0  ;;  %2266 = vst [vmem:[#allocation2 + $0x68] sm:$0xff] (!%p2789_p4), %v2242_v47 }
 0x305   : > { %v4206_v51 = vpop.f32.mrb[31].mxu0  ;;  %2267 = vst [vmem:[#allocation2 + $0x70] sm:$0xff] (!%p2789_p4), %v2244_v61 }
 0x306   : > { %2268 = vst [vmem:[#allocation2 + $0x78] sm:$0xff] %v4206_v51 }
 0x307 PF: > { %p2790_p9 = scmp.eq.s32.totalorder %s3490_s18, 0 }
 0x308   : > { %v2273_v10 = vld [vmem:[#allocation2] sm:$0xff] (!%p2790_p9)  ;;  %v2274_v3 = vld [vmem:[#allocation2 + $0x8] sm:$0xff] (!%p2790_p9)  ;;  %v2275_v59 = vld [vmem:[#allocation2 + $0x10] sm:$0xff] (!%p2790_p9) }
 0x309   : > { %2272 = sbr.rel (%p2790_p9) target bundleno = 787 (0x313), region = 56  ;;  %v2289_v31 = vadd.f32 (!%p2790_p9), %v2273_v10, %v2210_v41  ;;  %v2290_v4 = vadd.f32 (!%p2790_p9), %v2274_v3, %v2212_v33  ;;  %v2291_v35 = vadd.f32 (!%p2790_p9), %v2275_v59, %v2214_v2  ;;  %v2276_v5 = vld [vmem:[#allocation2 + $0x18] sm:$0xff] (!%p2790_p9)  ;;  %v2277_v6 = vld [vmem:[#allocation2 + $0x20] sm:$0xff] (!%p2790_p9)  ;;  %v2278_v25 = vld [vmem:[#allocation2 + $0x28] sm:$0xff] (!%p2790_p9) }
 0x30a   : > { %v2292_v38 = vadd.f32 (!%p2790_p9), %v2276_v5, %v2216_v57  ;;  %v2293_v28 = vadd.f32 (!%p2790_p9), %v2277_v6, %v2220_v15  ;;  %v2294_v9 = vadd.f32 (!%p2790_p9), %v2278_v25, %v2222_v48  ;;  %v2279_v42 = vld [vmem:[#allocation2 + $0x30] sm:$0xff] (!%p2790_p9)  ;;  %v2280_v11 = vld [vmem:[#allocation2 + $0x38] sm:$0xff] (!%p2790_p9)  ;;  %v2281_v29 = vld [vmem:[#allocation2 + $0x40] sm:$0xff] (!%p2790_p9) }
 0x30b   : > { %2305 = vst [vmem:[#allocation2] sm:$0xff] (!%p2790_p9), %v2289_v31  ;;  %2306 = vst [vmem:[#allocation2 + $0x8] sm:$0xff] (!%p2790_p9), %v2290_v4  ;;  %v2295_v13 = vadd.f32 (!%p2790_p9), %v2279_v42, %v2224_v17  ;;  %v2296_v23 = vadd.f32 (!%p2790_p9), %v2280_v11, %v2226_v43  ;;  %v2297_v24 = vadd.f32 (!%p2790_p9), %v2281_v29, %v2230_v63  ;;  %v2282_v52 = vld [vmem:[#allocation2 + $0x48] sm:$0xff] (!%p2790_p9)  ;;  %v2283_v16 = vld [vmem:[#allocation2 + $0x50] sm:$0xff] (!%p2790_p9) }
 0x30c   : > { %2307 = vst [vmem:[#allocation2 + $0x10] sm:$0xff] (!%p2790_p9), %v2291_v35  ;;  %v2284_v27 = vld [vmem:[#allocation2 + $0x58] sm:$0xff] (!%p2790_p9)  ;;  %2308 = vst [vmem:[#allocation2 + $0x18] sm:$0xff] (!%p2790_p9), %v2292_v38  ;;  %v2298_v30 = vadd.f32 (!%p2790_p9), %v2282_v52, %v2232_v18  ;;  %v2299_v32 = vadd.f32 (!%p2790_p9), %v2283_v16, %v2234_v50  ;;  %v2285_v19 = vld [vmem:[#allocation2 + $0x60] sm:$0xff] (!%p2790_p9) }
 0x30d   : > { %2309 = vst [vmem:[#allocation2 + $0x20] sm:$0xff] (!%p2790_p9), %v2293_v28  ;;  %2310 = vst [vmem:[#allocation2 + $0x28] sm:$0xff] (!%p2790_p9), %v2294_v9  ;;  %v2300_v34 = vadd.f32 (!%p2790_p9), %v2284_v27, %v2236_v0  ;;  %v2286_v56 = vld [vmem:[#allocation2 + $0x68] sm:$0xff] (!%p2790_p9)  ;;  %v2287_v22 = vld [vmem:[#allocation2 + $0x70] sm:$0xff] (!%p2790_p9)  ;;  %v2301_v40 = vadd.f32 (!%p2790_p9), %v2285_v19, %v2240_v21 }
 0x30e   : > { %2311 = vst [vmem:[#allocation2 + $0x30] sm:$0xff] (!%p2790_p9), %v2295_v13  ;;  %2312 = vst [vmem:[#allocation2 + $0x38] sm:$0xff] (!%p2790_p9), %v2296_v23  ;;  %v2302_v44 = vadd.f32 (!%p2790_p9), %v2286_v56, %v2242_v47  ;;  %v2303_v45 = vadd.f32 (!%p2790_p9), %v2287_v22, %v2244_v61  ;;  %v2288_v46 = vld [vmem:[#allocation2 + $0x78] sm:$0xff] (!%p2790_p9) }
 0x30f   : > { %2313 = vst [vmem:[#allocation2 + $0x40] sm:$0xff] (!%p2790_p9), %v2297_v24  ;;  %2314 = vst [vmem:[#allocation2 + $0x48] sm:$0xff] (!%p2790_p9), %v2298_v30  ;;  %v2304_v54 = vadd.f32 (!%p2790_p9), %v2288_v46, %v4206_v51 }
 0x310   : > { %2315 = vst [vmem:[#allocation2 + $0x50] sm:$0xff] %v2299_v32  ;;  %2316 = vst [vmem:[#allocation2 + $0x58] sm:$0xff] %v2300_v34 }
 0x311   : > { %2317 = vst [vmem:[#allocation2 + $0x60] sm:$0xff] %v2301_v40  ;;  %2318 = vst [vmem:[#allocation2 + $0x68] sm:$0xff] %v2302_v44 }
 0x312   : > { %2319 = vst [vmem:[#allocation2 + $0x70] sm:$0xff] %v2303_v45  ;;  %2320 = vst [vmem:[#allocation2 + $0x78] sm:$0xff] %v2304_v54 }
 0x313 PF: > { %p2791_p11 = scmp.ne.s32.totalorder %s3490_s18, 1 }
 0x315   : > { %2324 = sbr.rel (%p2791_p11) target bundleno = 799 (0x31f), region = 60  ;;  %v2325_v26 = vld [vmem:[#allocation2] sm:$0xff] (!%p2791_p11)  ;;  %v2326_v36 = vld [vmem:[#allocation2 + $0x8] sm:$0xff] (!%p2791_p11) }
 0x316   : > { %v2327_v49 = vld [vmem:[#allocation2 + $0x10] sm:$0xff] (!%p2791_p11)  ;;  %v2808_v37 = vpack.c.bf16 (!%p2791_p11), %v2326_v36, %v2325_v26  ;;  %v2328_v7 = vld [vmem:[#allocation2 + $0x18] sm:$0xff] (!%p2791_p11) }
 0x317   : > { %v2329_v14 = vld [vmem:[#allocation2 + $0x20] sm:$0xff] (!%p2791_p11)  ;;  %v2330_v39 = vld [vmem:[#allocation2 + $0x28] sm:$0xff] (!%p2791_p11)  ;;  %v2809_v20 = vpack.c.bf16 (!%p2791_p11), %v2328_v7, %v2327_v49 }
 0x318   : > { %v2810_v53 = vpack.c.bf16 (!%p2791_p11), %v2330_v39, %v2329_v14  ;;  %v2331_v55 = vld [vmem:[#allocation2 + $0x30] sm:$0xff] (!%p2791_p11)  ;;  %v2332_v8 = vld [vmem:[#allocation2 + $0x38] sm:$0xff] (!%p2791_p11)  ;;  %2389 = vst [vmem:[%s3770_s11] sm:$0xff] (!%p2791_p11), %v2808_v37  ;;  %v2337_v2 = vld [vmem:[#allocation2 + $0x60] sm:$0xff] (!%p2791_p11) }
 0x319   : > { %v2333_v58 = vld [vmem:[#allocation2 + $0x40] sm:$0xff] (!%p2791_p11)  ;;  %v2811_v12 = vpack.c.bf16 (!%p2791_p11), %v2332_v8, %v2331_v55  ;;  %v2334_v62 = vld [vmem:[#allocation2 + $0x48] sm:$0xff] (!%p2791_p11)  ;;  %2390 = vst [vmem:[%s3770_s11 + $0x8] sm:$0xff] (!%p2791_p11), %v2809_v20  ;;  %v2339_v15 = vld [vmem:[#allocation2 + $0x70] sm:$0xff] (!%p2791_p11) }
 0x31a   : > { %v2335_v1 = vld [vmem:[#allocation2 + $0x50] sm:$0xff] (!%p2791_p11)  ;;  %v2336_v60 = vld [vmem:[#allocation2 + $0x58] sm:$0xff] (!%p2791_p11)  ;;  %2391 = vst [vmem:[%s3770_s11 + $0x10] sm:$0xff] (!%p2791_p11), %v2810_v53  ;;  %v2812_v41 = vpack.c.bf16 (!%p2791_p11), %v2334_v62, %v2333_v58  ;;  %v2338_v57 = vld [vmem:[#allocation2 + $0x68] sm:$0xff] (!%p2791_p11) }
 0x31b   : > { %v2813_v33 = vpack.c.bf16 (!%p2791_p11), %v2336_v60, %v2335_v1  ;;  %2392 = vst [vmem:[%s3770_s11 + $0x18] sm:$0xff] (!%p2791_p11), %v2811_v12  ;;  %v2814_v48 = vpack.c.bf16 (!%p2791_p11), %v2338_v57, %v2337_v2  ;;  %v2340_v17 = vld [vmem:[#allocation2 + $0x78] sm:$0xff] (!%p2791_p11) }
 0x31c   : > { %2393 = vst [vmem:[%s3770_s11 + $0x20] sm:$0xff] %v2812_v41  ;;  %v2815_v43 = vpack.c.bf16 %v2340_v17, %v2339_v15 }
 0x31d   : > { %2394 = vst [vmem:[%s3770_s11 + $0x28] sm:$0xff] %v2813_v33  ;;  %2395 = vst [vmem:[%s3770_s11 + $0x30] sm:$0xff] %v2814_v48 }
 0x31e   : > { %2396 = vst [vmem:[%s3770_s11 + $0x38] sm:$0xff] %v2815_v43 }
 0x31f PF: > { %s20_s22 = sadd.s32 1, %s3506_s22   ;;  %s4274_s9 = sld [smem:[#allocation10_spill]] }
 0x320   : > { %p17_p2 = scmp.ge.s32.totalorder %s20_s22, 6   ;;  %s4275_s15 = smov %s3482_s16 }
 0x321   : > { %s4276_s16 = smov %s3486_s17  ;;  %s4277_s17 = smov %s3595_s28 }
 0x322   : > { %s4278_s18 = smov %s3498_s20  ;;  %s4279_s19 = smov %s3502_s21 }
 0x323   : > { %s4280_s20 = smov %s4283_s24  ;;  %19 = sbr.rel (!%p17_p2) target bundleno = 10 (0xa), region = 115 }
 0x325   : > { %s4281_s21 = smov %s4274_s9 }
 0x32a   :  { %2421 = vsyncpa [#allocation4], 1 }
 0x32b   :  { %2423 = vsyncpa [#allocation4 + $0x1], 1 }
 0x32c   :  { %2424 = vsyncpa [#allocation6], 1 }
 0x32d   :  { %2426 = vsyncpa [#allocation6 + $0x1], 1 }

</bundles_post_ra>
